<compile_context>
chip_gen: v7x
topology: tpu7x:2x2x1
jax: 0.10.0
libtpu: 0.0.40
codegen_flags: <defaults>
</compile_context>

<pallas_src>
import functools

import jax
import jax.numpy as jnp
from jax import lax
from jax.experimental import pallas as pl
from jax.experimental.pallas import tpu as pltpu


def _conv_same_kernel(x_ref, w_ref, b_ref, out_ref, *, C, O, K, H, W, pad, dilation):
    # x_ref  : (Nb, C, H*W)   per-image channel rows, spatial on the 128-lane axis
    # w_ref  : (O, C*K*K)     conv weights, one lane-column per tap
    # b_ref  : (O, 1)         bias
    # out_ref: (Nb, O, H*W)   lane-dense output rows (H*W = 256 -> unmasked stores)
    Nb = out_ref.shape[0]
    HW = H * W

    # ---------- hoisted once per kernel invocation (not per image / per tap) ----------
    w = w_ref[...].astype(jnp.float32)                                   # (O, C*K*K)
    acc0 = jnp.broadcast_to(b_ref[...].astype(jnp.float32), (O, HW))     # bias-init acc

    # Data-independent boundary masks, one per tap.  Row bounds are direct conditions on
    # the flat index p (row edges are multiples of W); column bounds use the column index
    # j, obtained without any vector integer div/mod.
    p = lax.broadcasted_iota(jnp.int32, (O, HW), 1)
    if W & (W - 1) == 0:
        j = p & (W - 1)            # W power of two (default config): cheap bitwise-and
    else:
        j = p % W                  # fallback for exotic widths
    masks = []
    for kh in range(K):
        for kw in range(K):
            dr = kh * dilation - pad           # input-row offset of this tap
            dc = kw * dilation - pad           # input-col offset of this tap
            conds = []
            if dr < 0:
                conds.append(p >= (-dr) * W)       # i + dr >= 0
            if dr > 0:
                conds.append(p < (H - dr) * W)     # i + dr <  H
            if dc < 0:
                conds.append(j >= -dc)             # j + dc >= 0
            if dc > 0:
                conds.append(j < W - dc)           # j + dc <  W
            m = None
            for cnd in conds:
                m = cnd if m is None else (m & cnd)
            masks.append(m)                        # None => tap is fully in-bounds

    # ---------- per-image MAC loop ----------
    # Nb is at most a handful here; keep the static unroll.  Switch to
    # lax.fori_loop(..., unroll=True) if batch_block is ever raised beyond ~4.
    for n in range(Nb):
        acc = acc0
        t = 0
        for c in range(C):
            # One lane-dense load per (image, channel); every tap below is an XLU roll of it.
            xc = jnp.broadcast_to(
                x_ref[n, pl.ds(c, 1), :].astype(jnp.float32), (O, HW))
            for kh in range(K):
                for kw in range(K):
                    delta = (kh * dilation - pad) * W + (kw * dilation - pad)
                    if delta == 0:
                        win = xc
                    else:
                        # win[p] == xc[p + delta]  (wrapped lanes are masked out below)
                        win = pltpu.roll(xc, shift=(-delta) % HW, axis=1)
                    m = masks[kh * K + kw]
                    if m is not None:
                        win = jnp.where(m, win, 0.0)
                    # VPU outer-product MAC: (O,1) weight column * (O,H*W) window.
                    acc = acc + w[:, t:t + 1] * win
                    t += 1
        # (O, 256) = 2 full 128-lane tiles -> unmasked vst.
        out_ref[n] = acc.astype(out_ref.dtype)


def _tensorcores_per_chip():
    """1 on v5e/v6e (single TensorCore); 2 on megacore chips (v7x, v5p, v4)."""
    try:
        kind = jax.devices()[0].device_kind.lower()
    except Exception:
        return 1
    if ("v7" in kind) or ("v5p" in kind) or ("v4" in kind):
        return 2
    return 1


def conv_block_forward(x, weight, bias, *, stride=1, pad=1, dilation=1, groups=1,
                       batch_block=None):
    """ConvBlock.forward: x (N,C,H,W), weight (O,C,K,K), bias (O,) -> (N,O,H,W)."""
    N, C, H, W = x.shape
    O, Cw, K, K2 = weight.shape
    assert Cw == C and K2 == K
    assert stride == 1 and groups == 1, "only stride=1, groups=1 implemented"
    Ho = H + 2 * pad - dilation * (K - 1)
    Wo = W + 2 * pad - dilation * (K - 1)
    assert (Ho, Wo) == (H, W), "only 'same' convs (2*pad == dilation*(K-1)) implemented"
    HW = H * W

    # Generation-aware grid: whole batch in one grid step on 1-TC chips (v5e/v6e), one
    # step per TensorCore on megacore chips (v7x) so the batch axis shards across cores.
    if batch_block is None:
        steps = _tensorcores_per_chip()
        if steps > N or N % steps != 0:
            steps = 1
        batch_block = N // steps
    assert N % batch_block == 0

    # Metadata-only reshapes (trailing-dim merges == layout bitcasts, no HBM round trips).
    x2 = x.reshape(N, C, HW)
    w2 = weight.reshape(O, C * K * K)
    b2 = bias.reshape(O, 1)

    kernel = functools.partial(_conv_same_kernel, C=C, O=O, K=K, H=H, W=W,
                               pad=pad, dilation=dilation)

    out_flat = pl.pallas_call(
        kernel,
        out_shape=jax.ShapeDtypeStruct((N, O, HW), x.dtype),
        grid=(N // batch_block,),
        in_specs=[
            pl.BlockSpec((batch_block, C, HW), lambda i: (i, 0, 0)),
            pl.BlockSpec((O, C * K * K), lambda i: (0, 0)),
            pl.BlockSpec((O, 1), lambda i: (0, 0)),
        ],
        out_specs=pl.BlockSpec((batch_block, O, HW), lambda i: (i, 0, 0)),
        compiler_params=pltpu.CompilerParams(dimension_semantics=("parallel",)),
    )(x2, w2, b2)

    return out_flat.reshape(N, O, H, W)   # bitcast back to NCHW


def _reference_forward(x, weight, bias, *, stride, pad, dilation, groups):
    """Pure-JAX reference matching PyTorch nn.Conv2d semantics."""
    O = weight.shape[0]
    y = jax.lax.conv_general_dilated(
        x, weight, (stride, stride), [(pad, pad), (pad, pad)],
        rhs_dilation=(dilation, dilation),
        dimension_numbers=("NCHW", "OIHW", "NCHW"),
        feature_group_count=groups)
    return y + bias.reshape(1, O, 1, 1)


if __name__ == "__main__":
    # Module config: in_feat=4, out_feat=8, kernel_size=3, stride=1, pad=1, dilation=1, groups=1.
    N, C, O = 2, 4, 8
    H = W = 16
    K, stride, pad, dilation, groups = 3, 1, 1, 1, 1

    key = jax.random.PRNGKey(0)
    kx, kw_, kb = jax.random.split(key, 3)
    x = jax.random.normal(kx, (N, C, H, W), dtype=jnp.float32)
    weight = jax.random.normal(kw_, (O, C, K, K), dtype=jnp.float32) * 0.2   # nn.Conv2d weight
    bias = jax.random.normal(kb, (O,), dtype=jnp.float32) * 0.1              # nn.Conv2d bias

    out = conv_block_forward(x, weight, bias, stride=stride, pad=pad,
                             dilation=dilation, groups=groups)
    out = jax.block_until_ready(out)

    ref = _reference_forward(x, weight, bias, stride=stride, pad=pad,
                             dilation=dilation, groups=groups)
    assert out.shape == (N, O, H, W), out.shape
    assert jnp.allclose(out, ref, atol=1e-4, rtol=1e-4), "mismatch vs reference"

    print("KERNEL_OK")
</pallas_src>

<mosaic_0001>
module attributes {stable_mosaic.version = 11 : i64} {
  func.func @_conv_same_kernel(%arg0: i32, %arg1: memref<2x4x256xf32, #tpu.memory_space<vmem>>, %arg2: memref<8x36xf32, #tpu.memory_space<vmem>>, %arg3: memref<8x1xf32, #tpu.memory_space<vmem>>, %arg4: memref<2x8x256xf32, #tpu.memory_space<vmem>>) attributes {dimension_semantics = [#tpu.dimension_semantics<parallel>], iteration_bounds = array<i64: 1>, scalar_prefetch = 0 : i64, scratch_operands = 0 : i64, tpu.core_type = #tpu.core_type<tc>, window_params = [{transform_indices = @transform_0, window_bounds = array<i64: 2, 4, 256>}, {pipeline_mode = #tpu.pipeline_mode<synchronous>, transform_indices = @transform_1, window_bounds = array<i64: 8, 36>}, {pipeline_mode = #tpu.pipeline_mode<synchronous>, transform_indices = @transform_2, window_bounds = array<i64: 8, 1>}, {transform_indices = @transform_3, window_bounds = array<i64: 2, 8, 256>}]} {
    %c0 = arith.constant 0 : index
    %c0_0 = arith.constant 0 : index
    %0 = vector.load %arg2[%c0, %c0_0] : memref<8x36xf32, #tpu.memory_space<vmem>>, vector<8x36xf32>
    %c0_1 = arith.constant 0 : index
    %c0_2 = arith.constant 0 : index
    %1 = vector.load %arg3[%c0_1, %c0_2] : memref<8x1xf32, #tpu.memory_space<vmem>>, vector<8x1xf32>
    %2 = vector.shape_cast %1 : vector<8x1xf32> to vector<8x1xf32>
    %3 = vector.broadcast %2 : vector<8x1xf32> to vector<8x256xf32>
    %4 = tpu.iota {dimensions = array<i32: 1>} : vector<8x256xi32>
    %c15_i32 = arith.constant 15 : i32
    %5 = vector.broadcast %c15_i32 : i32 to vector<8x256xi32>
    %6 = arith.andi %4, %5 : vector<8x256xi32>
    %c16_i32 = arith.constant 16 : i32
    %7 = vector.broadcast %c16_i32 : i32 to vector<8x256xi32>
    %8 = arith.cmpi sge, %4, %7 : vector<8x256xi32>
    %c1_i32 = arith.constant 1 : i32
    %9 = vector.broadcast %c1_i32 : i32 to vector<8x256xi32>
    %10 = arith.cmpi sge, %6, %9 : vector<8x256xi32>
    %11 = arith.andi %8, %10 : vector<8x256xi1>
    %c16_i32_3 = arith.constant 16 : i32
    %12 = vector.broadcast %c16_i32_3 : i32 to vector<8x256xi32>
    %13 = arith.cmpi sge, %4, %12 : vector<8x256xi32>
    %c16_i32_4 = arith.constant 16 : i32
    %14 = vector.broadcast %c16_i32_4 : i32 to vector<8x256xi32>
    %15 = arith.cmpi sge, %4, %14 : vector<8x256xi32>
    %c15_i32_5 = arith.constant 15 : i32
    %16 = vector.broadcast %c15_i32_5 : i32 to vector<8x256xi32>
    %17 = arith.cmpi slt, %6, %16 : vector<8x256xi32>
    %18 = arith.andi %15, %17 : vector<8x256xi1>
    %c1_i32_6 = arith.constant 1 : i32
    %19 = vector.broadcast %c1_i32_6 : i32 to vector<8x256xi32>
    %20 = arith.cmpi sge, %6, %19 : vector<8x256xi32>
    %c15_i32_7 = arith.constant 15 : i32
    %21 = vector.broadcast %c15_i32_7 : i32 to vector<8x256xi32>
    %22 = arith.cmpi slt, %6, %21 : vector<8x256xi32>
    %c240_i32 = arith.constant 240 : i32
    %23 = vector.broadcast %c240_i32 : i32 to vector<8x256xi32>
    %24 = arith.cmpi slt, %4, %23 : vector<8x256xi32>
    %c1_i32_8 = arith.constant 1 : i32
    %25 = vector.broadcast %c1_i32_8 : i32 to vector<8x256xi32>
    %26 = arith.cmpi sge, %6, %25 : vector<8x256xi32>
    %27 = arith.andi %24, %26 : vector<8x256xi1>
    %c240_i32_9 = arith.constant 240 : i32
    %28 = vector.broadcast %c240_i32_9 : i32 to vector<8x256xi32>
    %29 = arith.cmpi slt, %4, %28 : vector<8x256xi32>
    %c240_i32_10 = arith.constant 240 : i32
    %30 = vector.broadcast %c240_i32_10 : i32 to vector<8x256xi32>
    %31 = arith.cmpi slt, %4, %30 : vector<8x256xi32>
    %c15_i32_11 = arith.constant 15 : i32
    %32 = vector.broadcast %c15_i32_11 : i32 to vector<8x256xi32>
    %33 = arith.cmpi slt, %6, %32 : vector<8x256xi32>
    %34 = arith.andi %31, %33 : vector<8x256xi1>
    %c0_12 = arith.constant 0 : index
    %c0_13 = arith.constant 0 : index
    %c0_14 = arith.constant 0 : index
    %35 = vector.load %arg1[%c0_12, %c0_13, %c0_14] : memref<2x4x256xf32, #tpu.memory_space<vmem>>, vector<1x1x256xf32>
    %36 = vector.shape_cast %35 : vector<1x1x256xf32> to vector<1x256xf32>
    %37 = vector.shape_cast %36 : vector<1x256xf32> to vector<1x256xf32>
    %38 = vector.broadcast %37 : vector<1x256xf32> to vector<8x256xf32>
    %c17_i32 = arith.constant 17 : i32
    %39 = tpu.dynamic_rotate %38 by %c17_i32 dim 1 : vector<8x256xf32>, i32 -> vector<8x256xf32>
    %cst = arith.constant 0.000000e+00 : f32
    %40 = vector.broadcast %cst : f32 to vector<8x256xf32>
    %41 = arith.select %11, %39, %40 : vector<8x256xi1>, vector<8x256xf32>
    %42 = vector.extract_strided_slice %0 {offsets = [0, 0], sizes = [8, 1], strides = [1, 1]} : vector<8x36xf32> to vector<8x1xf32>
    %43 = vector.broadcast %42 : vector<8x1xf32> to vector<8x256xf32>
    %44 = arith.mulf %43, %41 : vector<8x256xf32>
    %45 = arith.addf %3, %44 : vector<8x256xf32>
    %c16_i32_15 = arith.constant 16 : i32
    %46 = tpu.dynamic_rotate %38 by %c16_i32_15 dim 1 : vector<8x256xf32>, i32 -> vector<8x256xf32>
    %cst_16 = arith.constant 0.000000e+00 : f32
    %47 = vector.broadcast %cst_16 : f32 to vector<8x256xf32>
    %48 = arith.select %13, %46, %47 : vector<8x256xi1>, vector<8x256xf32>
    %49 = vector.extract_strided_slice %0 {offsets = [0, 1], sizes = [8, 1], strides = [1, 1]} : vector<8x36xf32> to vector<8x1xf32>
    %50 = vector.broadcast %49 : vector<8x1xf32> to vector<8x256xf32>
    %51 = arith.mulf %50, %48 : vector<8x256xf32>
    %52 = arith.addf %45, %51 : vector<8x256xf32>
    %c15_i32_17 = arith.constant 15 : i32
    %53 = tpu.dynamic_rotate %38 by %c15_i32_17 dim 1 : vector<8x256xf32>, i32 -> vector<8x256xf32>
    %cst_18 = arith.constant 0.000000e+00 : f32
    %54 = vector.broadcast %cst_18 : f32 to vector<8x256xf32>
    %55 = arith.select %18, %53, %54 : vector<8x256xi1>, vector<8x256xf32>
    %56 = vector.extract_strided_slice %0 {offsets = [0, 2], sizes = [8, 1], strides = [1, 1]} : vector<8x36xf32> to vector<8x1xf32>
    %57 = vector.broadcast %56 : vector<8x1xf32> to vector<8x256xf32>
    %58 = arith.mulf %57, %55 : vector<8x256xf32>
    %59 = arith.addf %52, %58 : vector<8x256xf32>
    %c1_i32_19 = arith.constant 1 : i32
    %60 = tpu.dynamic_rotate %38 by %c1_i32_19 dim 1 : vector<8x256xf32>, i32 -> vector<8x256xf32>
    %cst_20 = arith.constant 0.000000e+00 : f32
    %61 = vector.broadcast %cst_20 : f32 to vector<8x256xf32>
    %62 = arith.select %20, %60, %61 : vector<8x256xi1>, vector<8x256xf32>
    %63 = vector.extract_strided_slice %0 {offsets = [0, 3], sizes = [8, 1], strides = [1, 1]} : vector<8x36xf32> to vector<8x1xf32>
    %64 = vector.broadcast %63 : vector<8x1xf32> to vector<8x256xf32>
    %65 = arith.mulf %64, %62 : vector<8x256xf32>
    %66 = arith.addf %59, %65 : vector<8x256xf32>
    %67 = vector.extract_strided_slice %0 {offsets = [0, 4], sizes = [8, 1], strides = [1, 1]} : vector<8x36xf32> to vector<8x1xf32>
    %68 = vector.broadcast %67 : vector<8x1xf32> to vector<8x256xf32>
    %69 = arith.mulf %68, %38 : vector<8x256xf32>
    %70 = arith.addf %66, %69 : vector<8x256xf32>
    %c255_i32 = arith.constant 255 : i32
    %71 = tpu.dynamic_rotate %38 by %c255_i32 dim 1 : vector<8x256xf32>, i32 -> vector<8x256xf32>
    %cst_21 = arith.constant 0.000000e+00 : f32
    %72 = vector.broadcast %cst_21 : f32 to vector<8x256xf32>
    %73 = arith.select %22, %71, %72 : vector<8x256xi1>, vector<8x256xf32>
    %74 = vector.extract_strided_slice %0 {offsets = [0, 5], sizes = [8, 1], strides = [1, 1]} : vector<8x36xf32> to vector<8x1xf32>
    %75 = vector.broadcast %74 : vector<8x1xf32> to vector<8x256xf32>
    %76 = arith.mulf %75, %73 : vector<8x256xf32>
    %77 = arith.addf %70, %76 : vector<8x256xf32>
    %c241_i32 = arith.constant 241 : i32
    %78 = tpu.dynamic_rotate %38 by %c241_i32 dim 1 : vector<8x256xf32>, i32 -> vector<8x256xf32>
    %cst_22 = arith.constant 0.000000e+00 : f32
    %79 = vector.broadcast %cst_22 : f32 to vector<8x256xf32>
    %80 = arith.select %27, %78, %79 : vector<8x256xi1>, vector<8x256xf32>
    %81 = vector.extract_strided_slice %0 {offsets = [0, 6], sizes = [8, 1], strides = [1, 1]} : vector<8x36xf32> to vector<8x1xf32>
    %82 = vector.broadcast %81 : vector<8x1xf32> to vector<8x256xf32>
    %83 = arith.mulf %82, %80 : vector<8x256xf32>
    %84 = arith.addf %77, %83 : vector<8x256xf32>
    %c240_i32_23 = arith.constant 240 : i32
    %85 = tpu.dynamic_rotate %38 by %c240_i32_23 dim 1 : vector<8x256xf32>, i32 -> vector<8x256xf32>
    %cst_24 = arith.constant 0.000000e+00 : f32
    %86 = vector.broadcast %cst_24 : f32 to vector<8x256xf32>
    %87 = arith.select %29, %85, %86 : vector<8x256xi1>, vector<8x256xf32>
    %88 = vector.extract_strided_slice %0 {offsets = [0, 7], sizes = [8, 1], strides = [1, 1]} : vector<8x36xf32> to vector<8x1xf32>
    %89 = vector.broadcast %88 : vector<8x1xf32> to vector<8x256xf32>
    %90 = arith.mulf %89, %87 : vector<8x256xf32>
    %91 = arith.addf %84, %90 : vector<8x256xf32>
    %c239_i32 = arith.constant 239 : i32
    %92 = tpu.dynamic_rotate %38 by %c239_i32 dim 1 : vector<8x256xf32>, i32 -> vector<8x256xf32>
    %cst_25 = arith.constant 0.000000e+00 : f32
    %93 = vector.broadcast %cst_25 : f32 to vector<8x256xf32>
    %94 = arith.select %34, %92, %93 : vector<8x256xi1>, vector<8x256xf32>
    %95 = vector.extract_strided_slice %0 {offsets = [0, 8], sizes = [8, 1], strides = [1, 1]} : vector<8x36xf32> to vector<8x1xf32>
    %96 = vector.broadcast %95 : vector<8x1xf32> to vector<8x256xf32>
    %97 = arith.mulf %96, %94 : vector<8x256xf32>
    %98 = arith.addf %91, %97 : vector<8x256xf32>
    %c0_26 = arith.constant 0 : index
    %c1 = arith.constant 1 : index
    %c0_27 = arith.constant 0 : index
    %99 = vector.load %arg1[%c0_26, %c1, %c0_27] : memref<2x4x256xf32, #tpu.memory_space<vmem>>, vector<1x1x256xf32>
    %100 = vector.shape_cast %99 : vector<1x1x256xf32> to vector<1x256xf32>
    %101 = vector.shape_cast %100 : vector<1x256xf32> to vector<1x256xf32>
    %102 = vector.broadcast %101 : vector<1x256xf32> to vector<8x256xf32>
    %c17_i32_28 = arith.constant 17 : i32
    %103 = tpu.dynamic_rotate %102 by %c17_i32_28 dim 1 : vector<8x256xf32>, i32 -> vector<8x256xf32>
    %cst_29 = arith.constant 0.000000e+00 : f32
    %104 = vector.broadcast %cst_29 : f32 to vector<8x256xf32>
    %105 = arith.select %11, %103, %104 : vector<8x256xi1>, vector<8x256xf32>
    %106 = vector.extract_strided_slice %0 {offsets = [0, 9], sizes = [8, 1], strides = [1, 1]} : vector<8x36xf32> to vector<8x1xf32>
    %107 = vector.broadcast %106 : vector<8x1xf32> to vector<8x256xf32>
    %108 = arith.mulf %107, %105 : vector<8x256xf32>
    %109 = arith.addf %98, %108 : vector<8x256xf32>
    %c16_i32_30 = arith.constant 16 : i32
    %110 = tpu.dynamic_rotate %102 by %c16_i32_30 dim 1 : vector<8x256xf32>, i32 -> vector<8x256xf32>
    %cst_31 = arith.constant 0.000000e+00 : f32
    %111 = vector.broadcast %cst_31 : f32 to vector<8x256xf32>
    %112 = arith.select %13, %110, %111 : vector<8x256xi1>, vector<8x256xf32>
    %113 = vector.extract_strided_slice %0 {offsets = [0, 10], sizes = [8, 1], strides = [1, 1]} : vector<8x36xf32> to vector<8x1xf32>
    %114 = vector.broadcast %113 : vector<8x1xf32> to vector<8x256xf32>
    %115 = arith.mulf %114, %112 : vector<8x256xf32>
    %116 = arith.addf %109, %115 : vector<8x256xf32>
    %c15_i32_32 = arith.constant 15 : i32
    %117 = tpu.dynamic_rotate %102 by %c15_i32_32 dim 1 : vector<8x256xf32>, i32 -> vector<8x256xf32>
    %cst_33 = arith.constant 0.000000e+00 : f32
    %118 = vector.broadcast %cst_33 : f32 to vector<8x256xf32>
    %119 = arith.select %18, %117, %118 : vector<8x256xi1>, vector<8x256xf32>
    %120 = vector.extract_strided_slice %0 {offsets = [0, 11], sizes = [8, 1], strides = [1, 1]} : vector<8x36xf32> to vector<8x1xf32>
    %121 = vector.broadcast %120 : vector<8x1xf32> to vector<8x256xf32>
    %122 = arith.mulf %121, %119 : vector<8x256xf32>
    %123 = arith.addf %116, %122 : vector<8x256xf32>
    %c1_i32_34 = arith.constant 1 : i32
    %124 = tpu.dynamic_rotate %102 by %c1_i32_34 dim 1 : vector<8x256xf32>, i32 -> vector<8x256xf32>
    %cst_35 = arith.constant 0.000000e+00 : f32
    %125 = vector.broadcast %cst_35 : f32 to vector<8x256xf32>
    %126 = arith.select %20, %124, %125 : vector<8x256xi1>, vector<8x256xf32>
    %127 = vector.extract_strided_slice %0 {offsets = [0, 12], sizes = [8, 1], strides = [1, 1]} : vector<8x36xf32> to vector<8x1xf32>
    %128 = vector.broadcast %127 : vector<8x1xf32> to vector<8x256xf32>
    %129 = arith.mulf %128, %126 : vector<8x256xf32>
    %130 = arith.addf %123, %129 : vector<8x256xf32>
    %131 = vector.extract_strided_slice %0 {offsets = [0, 13], sizes = [8, 1], strides = [1, 1]} : vector<8x36xf32> to vector<8x1xf32>
    %132 = vector.broadcast %131 : vector<8x1xf32> to vector<8x256xf32>
    %133 = arith.mulf %132, %102 : vector<8x256xf32>
    %134 = arith.addf %130, %133 : vector<8x256xf32>
    %c255_i32_36 = arith.constant 255 : i32
    %135 = tpu.dynamic_rotate %102 by %c255_i32_36 dim 1 : vector<8x256xf32>, i32 -> vector<8x256xf32>
    %cst_37 = arith.constant 0.000000e+00 : f32
    %136 = vector.broadcast %cst_37 : f32 to vector<8x256xf32>
    %137 = arith.select %22, %135, %136 : vector<8x256xi1>, vector<8x256xf32>
    %138 = vector.extract_strided_slice %0 {offsets = [0, 14], sizes = [8, 1], strides = [1, 1]} : vector<8x36xf32> to vector<8x1xf32>
    %139 = vector.broadcast %138 : vector<8x1xf32> to vector<8x256xf32>
    %140 = arith.mulf %139, %137 : vector<8x256xf32>
    %141 = arith.addf %134, %140 : vector<8x256xf32>
    %c241_i32_38 = arith.constant 241 : i32
    %142 = tpu.dynamic_rotate %102 by %c241_i32_38 dim 1 : vector<8x256xf32>, i32 -> vector<8x256xf32>
    %cst_39 = arith.constant 0.000000e+00 : f32
    %143 = vector.broadcast %cst_39 : f32 to vector<8x256xf32>
    %144 = arith.select %27, %142, %143 : vector<8x256xi1>, vector<8x256xf32>
    %145 = vector.extract_strided_slice %0 {offsets = [0, 15], sizes = [8, 1], strides = [1, 1]} : vector<8x36xf32> to vector<8x1xf32>
    %146 = vector.broadcast %145 : vector<8x1xf32> to vector<8x256xf32>
    %147 = arith.mulf %146, %144 : vector<8x256xf32>
    %148 = arith.addf %141, %147 : vector<8x256xf32>
    %c240_i32_40 = arith.constant 240 : i32
    %149 = tpu.dynamic_rotate %102 by %c240_i32_40 dim 1 : vector<8x256xf32>, i32 -> vector<8x256xf32>
    %cst_41 = arith.constant 0.000000e+00 : f32
    %150 = vector.broadcast %cst_41 : f32 to vector<8x256xf32>
    %151 = arith.select %29, %149, %150 : vector<8x256xi1>, vector<8x256xf32>
    %152 = vector.extract_strided_slice %0 {offsets = [0, 16], sizes = [8, 1], strides = [1, 1]} : vector<8x36xf32> to vector<8x1xf32>
    %153 = vector.broadcast %152 : vector<8x1xf32> to vector<8x256xf32>
    %154 = arith.mulf %153, %151 : vector<8x256xf32>
    %155 = arith.addf %148, %154 : vector<8x256xf32>
    %c239_i32_42 = arith.constant 239 : i32
    %156 = tpu.dynamic_rotate %102 by %c239_i32_42 dim 1 : vector<8x256xf32>, i32 -> vector<8x256xf32>
    %cst_43 = arith.constant 0.000000e+00 : f32
    %157 = vector.broadcast %cst_43 : f32 to vector<8x256xf32>
    %158 = arith.select %34, %156, %157 : vector<8x256xi1>, vector<8x256xf32>
    %159 = vector.extract_strided_slice %0 {offsets = [0, 17], sizes = [8, 1], strides = [1, 1]} : vector<8x36xf32> to vector<8x1xf32>
    %160 = vector.broadcast %159 : vector<8x1xf32> to vector<8x256xf32>
    %161 = arith.mulf %160, %158 : vector<8x256xf32>
    %162 = arith.addf %155, %161 : vector<8x256xf32>
    %c0_44 = arith.constant 0 : index
    %c2 = arith.constant 2 : index
    %c0_45 = arith.constant 0 : index
    %163 = vector.load %arg1[%c0_44, %c2, %c0_45] : memref<2x4x256xf32, #tpu.memory_space<vmem>>, vector<1x1x256xf32>
    %164 = vector.shape_cast %163 : vector<1x1x256xf32> to vector<1x256xf32>
    %165 = vector.shape_cast %164 : vector<1x256xf32> to vector<1x256xf32>
    %166 = vector.broadcast %165 : vector<1x256xf32> to vector<8x256xf32>
    %c17_i32_46 = arith.constant 17 : i32
    %167 = tpu.dynamic_rotate %166 by %c17_i32_46 dim 1 : vector<8x256xf32>, i32 -> vector<8x256xf32>
    %cst_47 = arith.constant 0.000000e+00 : f32
    %168 = vector.broadcast %cst_47 : f32 to vector<8x256xf32>
    %169 = arith.select %11, %167, %168 : vector<8x256xi1>, vector<8x256xf32>
    %170 = vector.extract_strided_slice %0 {offsets = [0, 18], sizes = [8, 1], strides = [1, 1]} : vector<8x36xf32> to vector<8x1xf32>
    %171 = vector.broadcast %170 : vector<8x1xf32> to vector<8x256xf32>
    %172 = arith.mulf %171, %169 : vector<8x256xf32>
    %173 = arith.addf %162, %172 : vector<8x256xf32>
    %c16_i32_48 = arith.constant 16 : i32
    %174 = tpu.dynamic_rotate %166 by %c16_i32_48 dim 1 : vector<8x256xf32>, i32 -> vector<8x256xf32>
    %cst_49 = arith.constant 0.000000e+00 : f32
    %175 = vector.broadcast %cst_49 : f32 to vector<8x256xf32>
    %176 = arith.select %13, %174, %175 : vector<8x256xi1>, vector<8x256xf32>
    %177 = vector.extract_strided_slice %0 {offsets = [0, 19], sizes = [8, 1], strides = [1, 1]} : vector<8x36xf32> to vector<8x1xf32>
    %178 = vector.broadcast %177 : vector<8x1xf32> to vector<8x256xf32>
    %179 = arith.mulf %178, %176 : vector<8x256xf32>
    %180 = arith.addf %173, %179 : vector<8x256xf32>
    %c15_i32_50 = arith.constant 15 : i32
    %181 = tpu.dynamic_rotate %166 by %c15_i32_50 dim 1 : vector<8x256xf32>, i32 -> vector<8x256xf32>
    %cst_51 = arith.constant 0.000000e+00 : f32
    %182 = vector.broadcast %cst_51 : f32 to vector<8x256xf32>
    %183 = arith.select %18, %181, %182 : vector<8x256xi1>, vector<8x256xf32>
    %184 = vector.extract_strided_slice %0 {offsets = [0, 20], sizes = [8, 1], strides = [1, 1]} : vector<8x36xf32> to vector<8x1xf32>
    %185 = vector.broadcast %184 : vector<8x1xf32> to vector<8x256xf32>
    %186 = arith.mulf %185, %183 : vector<8x256xf32>
    %187 = arith.addf %180, %186 : vector<8x256xf32>
    %c1_i32_52 = arith.constant 1 : i32
    %188 = tpu.dynamic_rotate %166 by %c1_i32_52 dim 1 : vector<8x256xf32>, i32 -> vector<8x256xf32>
    %cst_53 = arith.constant 0.000000e+00 : f32
    %189 = vector.broadcast %cst_53 : f32 to vector<8x256xf32>
    %190 = arith.select %20, %188, %189 : vector<8x256xi1>, vector<8x256xf32>
    %191 = vector.extract_strided_slice %0 {offsets = [0, 21], sizes = [8, 1], strides = [1, 1]} : vector<8x36xf32> to vector<8x1xf32>
    %192 = vector.broadcast %191 : vector<8x1xf32> to vector<8x256xf32>
    %193 = arith.mulf %192, %190 : vector<8x256xf32>
    %194 = arith.addf %187, %193 : vector<8x256xf32>
    %195 = vector.extract_strided_slice %0 {offsets = [0, 22], sizes = [8, 1], strides = [1, 1]} : vector<8x36xf32> to vector<8x1xf32>
    %196 = vector.broadcast %195 : vector<8x1xf32> to vector<8x256xf32>
    %197 = arith.mulf %196, %166 : vector<8x256xf32>
    %198 = arith.addf %194, %197 : vector<8x256xf32>
    %c255_i32_54 = arith.constant 255 : i32
    %199 = tpu.dynamic_rotate %166 by %c255_i32_54 dim 1 : vector<8x256xf32>, i32 -> vector<8x256xf32>
    %cst_55 = arith.constant 0.000000e+00 : f32
    %200 = vector.broadcast %cst_55 : f32 to vector<8x256xf32>
    %201 = arith.select %22, %199, %200 : vector<8x256xi1>, vector<8x256xf32>
    %202 = vector.extract_strided_slice %0 {offsets = [0, 23], sizes = [8, 1], strides = [1, 1]} : vector<8x36xf32> to vector<8x1xf32>
    %203 = vector.broadcast %202 : vector<8x1xf32> to vector<8x256xf32>
    %204 = arith.mulf %203, %201 : vector<8x256xf32>
    %205 = arith.addf %198, %204 : vector<8x256xf32>
    %c241_i32_56 = arith.constant 241 : i32
    %206 = tpu.dynamic_rotate %166 by %c241_i32_56 dim 1 : vector<8x256xf32>, i32 -> vector<8x256xf32>
    %cst_57 = arith.constant 0.000000e+00 : f32
    %207 = vector.broadcast %cst_57 : f32 to vector<8x256xf32>
    %208 = arith.select %27, %206, %207 : vector<8x256xi1>, vector<8x256xf32>
    %209 = vector.extract_strided_slice %0 {offsets = [0, 24], sizes = [8, 1], strides = [1, 1]} : vector<8x36xf32> to vector<8x1xf32>
    %210 = vector.broadcast %209 : vector<8x1xf32> to vector<8x256xf32>
    %211 = arith.mulf %210, %208 : vector<8x256xf32>
    %212 = arith.addf %205, %211 : vector<8x256xf32>
    %c240_i32_58 = arith.constant 240 : i32
    %213 = tpu.dynamic_rotate %166 by %c240_i32_58 dim 1 : vector<8x256xf32>, i32 -> vector<8x256xf32>
    %cst_59 = arith.constant 0.000000e+00 : f32
    %214 = vector.broadcast %cst_59 : f32 to vector<8x256xf32>
    %215 = arith.select %29, %213, %214 : vector<8x256xi1>, vector<8x256xf32>
    %216 = vector.extract_strided_slice %0 {offsets = [0, 25], sizes = [8, 1], strides = [1, 1]} : vector<8x36xf32> to vector<8x1xf32>
    %217 = vector.broadcast %216 : vector<8x1xf32> to vector<8x256xf32>
    %218 = arith.mulf %217, %215 : vector<8x256xf32>
    %219 = arith.addf %212, %218 : vector<8x256xf32>
    %c239_i32_60 = arith.constant 239 : i32
    %220 = tpu.dynamic_rotate %166 by %c239_i32_60 dim 1 : vector<8x256xf32>, i32 -> vector<8x256xf32>
    %cst_61 = arith.constant 0.000000e+00 : f32
    %221 = vector.broadcast %cst_61 : f32 to vector<8x256xf32>
    %222 = arith.select %34, %220, %221 : vector<8x256xi1>, vector<8x256xf32>
    %223 = vector.extract_strided_slice %0 {offsets = [0, 26], sizes = [8, 1], strides = [1, 1]} : vector<8x36xf32> to vector<8x1xf32>
    %224 = vector.broadcast %223 : vector<8x1xf32> to vector<8x256xf32>
    %225 = arith.mulf %224, %222 : vector<8x256xf32>
    %226 = arith.addf %219, %225 : vector<8x256xf32>
    %c0_62 = arith.constant 0 : index
    %c3 = arith.constant 3 : index
    %c0_63 = arith.constant 0 : index
    %227 = vector.load %arg1[%c0_62, %c3, %c0_63] : memref<2x4x256xf32, #tpu.memory_space<vmem>>, vector<1x1x256xf32>
    %228 = vector.shape_cast %227 : vector<1x1x256xf32> to vector<1x256xf32>
    %229 = vector.shape_cast %228 : vector<1x256xf32> to vector<1x256xf32>
    %230 = vector.broadcast %229 : vector<1x256xf32> to vector<8x256xf32>
    %c17_i32_64 = arith.constant 17 : i32
    %231 = tpu.dynamic_rotate %230 by %c17_i32_64 dim 1 : vector<8x256xf32>, i32 -> vector<8x256xf32>
    %cst_65 = arith.constant 0.000000e+00 : f32
    %232 = vector.broadcast %cst_65 : f32 to vector<8x256xf32>
    %233 = arith.select %11, %231, %232 : vector<8x256xi1>, vector<8x256xf32>
    %234 = vector.extract_strided_slice %0 {offsets = [0, 27], sizes = [8, 1], strides = [1, 1]} : vector<8x36xf32> to vector<8x1xf32>
    %235 = vector.broadcast %234 : vector<8x1xf32> to vector<8x256xf32>
    %236 = arith.mulf %235, %233 : vector<8x256xf32>
    %237 = arith.addf %226, %236 : vector<8x256xf32>
    %c16_i32_66 = arith.constant 16 : i32
    %238 = tpu.dynamic_rotate %230 by %c16_i32_66 dim 1 : vector<8x256xf32>, i32 -> vector<8x256xf32>
    %cst_67 = arith.constant 0.000000e+00 : f32
    %239 = vector.broadcast %cst_67 : f32 to vector<8x256xf32>
    %240 = arith.select %13, %238, %239 : vector<8x256xi1>, vector<8x256xf32>
    %241 = vector.extract_strided_slice %0 {offsets = [0, 28], sizes = [8, 1], strides = [1, 1]} : vector<8x36xf32> to vector<8x1xf32>
    %242 = vector.broadcast %241 : vector<8x1xf32> to vector<8x256xf32>
    %243 = arith.mulf %242, %240 : vector<8x256xf32>
    %244 = arith.addf %237, %243 : vector<8x256xf32>
    %c15_i32_68 = arith.constant 15 : i32
    %245 = tpu.dynamic_rotate %230 by %c15_i32_68 dim 1 : vector<8x256xf32>, i32 -> vector<8x256xf32>
    %cst_69 = arith.constant 0.000000e+00 : f32
    %246 = vector.broadcast %cst_69 : f32 to vector<8x256xf32>
    %247 = arith.select %18, %245, %246 : vector<8x256xi1>, vector<8x256xf32>
    %248 = vector.extract_strided_slice %0 {offsets = [0, 29], sizes = [8, 1], strides = [1, 1]} : vector<8x36xf32> to vector<8x1xf32>
    %249 = vector.broadcast %248 : vector<8x1xf32> to vector<8x256xf32>
    %250 = arith.mulf %249, %247 : vector<8x256xf32>
    %251 = arith.addf %244, %250 : vector<8x256xf32>
    %c1_i32_70 = arith.constant 1 : i32
    %252 = tpu.dynamic_rotate %230 by %c1_i32_70 dim 1 : vector<8x256xf32>, i32 -> vector<8x256xf32>
    %cst_71 = arith.constant 0.000000e+00 : f32
    %253 = vector.broadcast %cst_71 : f32 to vector<8x256xf32>
    %254 = arith.select %20, %252, %253 : vector<8x256xi1>, vector<8x256xf32>
    %255 = vector.extract_strided_slice %0 {offsets = [0, 30], sizes = [8, 1], strides = [1, 1]} : vector<8x36xf32> to vector<8x1xf32>
    %256 = vector.broadcast %255 : vector<8x1xf32> to vector<8x256xf32>
    %257 = arith.mulf %256, %254 : vector<8x256xf32>
    %258 = arith.addf %251, %257 : vector<8x256xf32>
    %259 = vector.extract_strided_slice %0 {offsets = [0, 31], sizes = [8, 1], strides = [1, 1]} : vector<8x36xf32> to vector<8x1xf32>
    %260 = vector.broadcast %259 : vector<8x1xf32> to vector<8x256xf32>
    %261 = arith.mulf %260, %230 : vector<8x256xf32>
    %262 = arith.addf %258, %261 : vector<8x256xf32>
    %c255_i32_72 = arith.constant 255 : i32
    %263 = tpu.dynamic_rotate %230 by %c255_i32_72 dim 1 : vector<8x256xf32>, i32 -> vector<8x256xf32>
    %cst_73 = arith.constant 0.000000e+00 : f32
    %264 = vector.broadcast %cst_73 : f32 to vector<8x256xf32>
    %265 = arith.select %22, %263, %264 : vector<8x256xi1>, vector<8x256xf32>
    %266 = vector.extract_strided_slice %0 {offsets = [0, 32], sizes = [8, 1], strides = [1, 1]} : vector<8x36xf32> to vector<8x1xf32>
    %267 = vector.broadcast %266 : vector<8x1xf32> to vector<8x256xf32>
    %268 = arith.mulf %267, %265 : vector<8x256xf32>
    %269 = arith.addf %262, %268 : vector<8x256xf32>
    %c241_i32_74 = arith.constant 241 : i32
    %270 = tpu.dynamic_rotate %230 by %c241_i32_74 dim 1 : vector<8x256xf32>, i32 -> vector<8x256xf32>
    %cst_75 = arith.constant 0.000000e+00 : f32
    %271 = vector.broadcast %cst_75 : f32 to vector<8x256xf32>
    %272 = arith.select %27, %270, %271 : vector<8x256xi1>, vector<8x256xf32>
    %273 = vector.extract_strided_slice %0 {offsets = [0, 33], sizes = [8, 1], strides = [1, 1]} : vector<8x36xf32> to vector<8x1xf32>
    %274 = vector.broadcast %273 : vector<8x1xf32> to vector<8x256xf32>
    %275 = arith.mulf %274, %272 : vector<8x256xf32>
    %276 = arith.addf %269, %275 : vector<8x256xf32>
    %c240_i32_76 = arith.constant 240 : i32
    %277 = tpu.dynamic_rotate %230 by %c240_i32_76 dim 1 : vector<8x256xf32>, i32 -> vector<8x256xf32>
    %cst_77 = arith.constant 0.000000e+00 : f32
    %278 = vector.broadcast %cst_77 : f32 to vector<8x256xf32>
    %279 = arith.select %29, %277, %278 : vector<8x256xi1>, vector<8x256xf32>
    %280 = vector.extract_strided_slice %0 {offsets = [0, 34], sizes = [8, 1], strides = [1, 1]} : vector<8x36xf32> to vector<8x1xf32>
    %281 = vector.broadcast %280 : vector<8x1xf32> to vector<8x256xf32>
    %282 = arith.mulf %281, %279 : vector<8x256xf32>
    %283 = arith.addf %276, %282 : vector<8x256xf32>
    %c239_i32_78 = arith.constant 239 : i32
    %284 = tpu.dynamic_rotate %230 by %c239_i32_78 dim 1 : vector<8x256xf32>, i32 -> vector<8x256xf32>
    %cst_79 = arith.constant 0.000000e+00 : f32
    %285 = vector.broadcast %cst_79 : f32 to vector<8x256xf32>
    %286 = arith.select %34, %284, %285 : vector<8x256xi1>, vector<8x256xf32>
    %287 = vector.extract_strided_slice %0 {offsets = [0, 35], sizes = [8, 1], strides = [1, 1]} : vector<8x36xf32> to vector<8x1xf32>
    %288 = vector.broadcast %287 : vector<8x1xf32> to vector<8x256xf32>
    %289 = arith.mulf %288, %286 : vector<8x256xf32>
    %290 = arith.addf %283, %289 : vector<8x256xf32>
    %c0_80 = arith.constant 0 : index
    %c0_81 = arith.constant 0 : index
    %c0_82 = arith.constant 0 : index
    %291 = vector.load %arg4[%c0_80, %c0_81, %c0_82] : memref<2x8x256xf32, #tpu.memory_space<vmem>>, vector<1x8x256xf32>
    %292 = vector.shape_cast %291 : vector<1x8x256xf32> to vector<8x256xf32>
    %293 = vector.shape_cast %290 : vector<8x256xf32> to vector<1x8x256xf32>
    tpu.vector_store %arg4[%c0_80, %c0_81, %c0_82], %293 {strides = array<i32>} : memref<2x8x256xf32, #tpu.memory_space<vmem>>, vector<1x8x256xf32>,
    %c1_83 = arith.constant 1 : index
    %c0_84 = arith.constant 0 : index
    %c0_85 = arith.constant 0 : index
    %294 = vector.load %arg1[%c1_83, %c0_84, %c0_85] : memref<2x4x256xf32, #tpu.memory_space<vmem>>, vector<1x1x256xf32>
    %295 = vector.shape_cast %294 : vector<1x1x256xf32> to vector<1x256xf32>
    %296 = vector.shape_cast %295 : vector<1x256xf32> to vector<1x256xf32>
    %297 = vector.broadcast %296 : vector<1x256xf32> to vector<8x256xf32>
    %c17_i32_86 = arith.constant 17 : i32
    %298 = tpu.dynamic_rotate %297 by %c17_i32_86 dim 1 : vector<8x256xf32>, i32 -> vector<8x256xf32>
    %cst_87 = arith.constant 0.000000e+00 : f32
    %299 = vector.broadcast %cst_87 : f32 to vector<8x256xf32>
    %300 = arith.select %11, %298, %299 : vector<8x256xi1>, vector<8x256xf32>
    %301 = vector.extract_strided_slice %0 {offsets = [0, 0], sizes = [8, 1], strides = [1, 1]} : vector<8x36xf32> to vector<8x1xf32>
    %302 = vector.broadcast %301 : vector<8x1xf32> to vector<8x256xf32>
    %303 = arith.mulf %302, %300 : vector<8x256xf32>
    %304 = arith.addf %3, %303 : vector<8x256xf32>
    %c16_i32_88 = arith.constant 16 : i32
    %305 = tpu.dynamic_rotate %297 by %c16_i32_88 dim 1 : vector<8x256xf32>, i32 -> vector<8x256xf32>
    %cst_89 = arith.constant 0.000000e+00 : f32
    %306 = vector.broadcast %cst_89 : f32 to vector<8x256xf32>
    %307 = arith.select %13, %305, %306 : vector<8x256xi1>, vector<8x256xf32>
    %308 = vector.extract_strided_slice %0 {offsets = [0, 1], sizes = [8, 1], strides = [1, 1]} : vector<8x36xf32> to vector<8x1xf32>
    %309 = vector.broadcast %308 : vector<8x1xf32> to vector<8x256xf32>
    %310 = arith.mulf %309, %307 : vector<8x256xf32>
    %311 = arith.addf %304, %310 : vector<8x256xf32>
    %c15_i32_90 = arith.constant 15 : i32
    %312 = tpu.dynamic_rotate %297 by %c15_i32_90 dim 1 : vector<8x256xf32>, i32 -> vector<8x256xf32>
    %cst_91 = arith.constant 0.000000e+00 : f32
    %313 = vector.broadcast %cst_91 : f32 to vector<8x256xf32>
    %314 = arith.select %18, %312, %313 : vector<8x256xi1>, vector<8x256xf32>
    %315 = vector.extract_strided_slice %0 {offsets = [0, 2], sizes = [8, 1], strides = [1, 1]} : vector<8x36xf32> to vector<8x1xf32>
    %316 = vector.broadcast %315 : vector<8x1xf32> to vector<8x256xf32>
    %317 = arith.mulf %316, %314 : vector<8x256xf32>
    %318 = arith.addf %311, %317 : vector<8x256xf32>
    %c1_i32_92 = arith.constant 1 : i32
    %319 = tpu.dynamic_rotate %297 by %c1_i32_92 dim 1 : vector<8x256xf32>, i32 -> vector<8x256xf32>
    %cst_93 = arith.constant 0.000000e+00 : f32
    %320 = vector.broadcast %cst_93 : f32 to vector<8x256xf32>
    %321 = arith.select %20, %319, %320 : vector<8x256xi1>, vector<8x256xf32>
    %322 = vector.extract_strided_slice %0 {offsets = [0, 3], sizes = [8, 1], strides = [1, 1]} : vector<8x36xf32> to vector<8x1xf32>
    %323 = vector.broadcast %322 : vector<8x1xf32> to vector<8x256xf32>
    %324 = arith.mulf %323, %321 : vector<8x256xf32>
    %325 = arith.addf %318, %324 : vector<8x256xf32>
    %326 = vector.extract_strided_slice %0 {offsets = [0, 4], sizes = [8, 1], strides = [1, 1]} : vector<8x36xf32> to vector<8x1xf32>
    %327 = vector.broadcast %326 : vector<8x1xf32> to vector<8x256xf32>
    %328 = arith.mulf %327, %297 : vector<8x256xf32>
    %329 = arith.addf %325, %328 : vector<8x256xf32>
    %c255_i32_94 = arith.constant 255 : i32
    %330 = tpu.dynamic_rotate %297 by %c255_i32_94 dim 1 : vector<8x256xf32>, i32 -> vector<8x256xf32>
    %cst_95 = arith.constant 0.000000e+00 : f32
    %331 = vector.broadcast %cst_95 : f32 to vector<8x256xf32>
    %332 = arith.select %22, %330, %331 : vector<8x256xi1>, vector<8x256xf32>
    %333 = vector.extract_strided_slice %0 {offsets = [0, 5], sizes = [8, 1], strides = [1, 1]} : vector<8x36xf32> to vector<8x1xf32>
    %334 = vector.broadcast %333 : vector<8x1xf32> to vector<8x256xf32>
    %335 = arith.mulf %334, %332 : vector<8x256xf32>
    %336 = arith.addf %329, %335 : vector<8x256xf32>
    %c241_i32_96 = arith.constant 241 : i32
    %337 = tpu.dynamic_rotate %297 by %c241_i32_96 dim 1 : vector<8x256xf32>, i32 -> vector<8x256xf32>
    %cst_97 = arith.constant 0.000000e+00 : f32
    %338 = vector.broadcast %cst_97 : f32 to vector<8x256xf32>
    %339 = arith.select %27, %337, %338 : vector<8x256xi1>, vector<8x256xf32>
    %340 = vector.extract_strided_slice %0 {offsets = [0, 6], sizes = [8, 1], strides = [1, 1]} : vector<8x36xf32> to vector<8x1xf32>
    %341 = vector.broadcast %340 : vector<8x1xf32> to vector<8x256xf32>
    %342 = arith.mulf %341, %339 : vector<8x256xf32>
    %343 = arith.addf %336, %342 : vector<8x256xf32>
    %c240_i32_98 = arith.constant 240 : i32
    %344 = tpu.dynamic_rotate %297 by %c240_i32_98 dim 1 : vector<8x256xf32>, i32 -> vector<8x256xf32>
    %cst_99 = arith.constant 0.000000e+00 : f32
    %345 = vector.broadcast %cst_99 : f32 to vector<8x256xf32>
    %346 = arith.select %29, %344, %345 : vector<8x256xi1>, vector<8x256xf32>
    %347 = vector.extract_strided_slice %0 {offsets = [0, 7], sizes = [8, 1], strides = [1, 1]} : vector<8x36xf32> to vector<8x1xf32>
    %348 = vector.broadcast %347 : vector<8x1xf32> to vector<8x256xf32>
    %349 = arith.mulf %348, %346 : vector<8x256xf32>
    %350 = arith.addf %343, %349 : vector<8x256xf32>
    %c239_i32_100 = arith.constant 239 : i32
    %351 = tpu.dynamic_rotate %297 by %c239_i32_100 dim 1 : vector<8x256xf32>, i32 -> vector<8x256xf32>
    %cst_101 = arith.constant 0.000000e+00 : f32
    %352 = vector.broadcast %cst_101 : f32 to vector<8x256xf32>
    %353 = arith.select %34, %351, %352 : vector<8x256xi1>, vector<8x256xf32>
    %354 = vector.extract_strided_slice %0 {offsets = [0, 8], sizes = [8, 1], strides = [1, 1]} : vector<8x36xf32> to vector<8x1xf32>
    %355 = vector.broadcast %354 : vector<8x1xf32> to vector<8x256xf32>
    %356 = arith.mulf %355, %353 : vector<8x256xf32>
    %357 = arith.addf %350, %356 : vector<8x256xf32>
    %c1_102 = arith.constant 1 : index
    %c1_103 = arith.constant 1 : index
    %c0_104 = arith.constant 0 : index
    %358 = vector.load %arg1[%c1_102, %c1_103, %c0_104] : memref<2x4x256xf32, #tpu.memory_space<vmem>>, vector<1x1x256xf32>
    %359 = vector.shape_cast %358 : vector<1x1x256xf32> to vector<1x256xf32>
    %360 = vector.shape_cast %359 : vector<1x256xf32> to vector<1x256xf32>
    %361 = vector.broadcast %360 : vector<1x256xf32> to vector<8x256xf32>
    %c17_i32_105 = arith.constant 17 : i32
    %362 = tpu.dynamic_rotate %361 by %c17_i32_105 dim 1 : vector<8x256xf32>, i32 -> vector<8x256xf32>
    %cst_106 = arith.constant 0.000000e+00 : f32
    %363 = vector.broadcast %cst_106 : f32 to vector<8x256xf32>
    %364 = arith.select %11, %362, %363 : vector<8x256xi1>, vector<8x256xf32>
    %365 = vector.extract_strided_slice %0 {offsets = [0, 9], sizes = [8, 1], strides = [1, 1]} : vector<8x36xf32> to vector<8x1xf32>
    %366 = vector.broadcast %365 : vector<8x1xf32> to vector<8x256xf32>
    %367 = arith.mulf %366, %364 : vector<8x256xf32>
    %368 = arith.addf %357, %367 : vector<8x256xf32>
    %c16_i32_107 = arith.constant 16 : i32
    %369 = tpu.dynamic_rotate %361 by %c16_i32_107 dim 1 : vector<8x256xf32>, i32 -> vector<8x256xf32>
    %cst_108 = arith.constant 0.000000e+00 : f32
    %370 = vector.broadcast %cst_108 : f32 to vector<8x256xf32>
    %371 = arith.select %13, %369, %370 : vector<8x256xi1>, vector<8x256xf32>
    %372 = vector.extract_strided_slice %0 {offsets = [0, 10], sizes = [8, 1], strides = [1, 1]} : vector<8x36xf32> to vector<8x1xf32>
    %373 = vector.broadcast %372 : vector<8x1xf32> to vector<8x256xf32>
    %374 = arith.mulf %373, %371 : vector<8x256xf32>
    %375 = arith.addf %368, %374 : vector<8x256xf32>
    %c15_i32_109 = arith.constant 15 : i32
    %376 = tpu.dynamic_rotate %361 by %c15_i32_109 dim 1 : vector<8x256xf32>, i32 -> vector<8x256xf32>
    %cst_110 = arith.constant 0.000000e+00 : f32
    %377 = vector.broadcast %cst_110 : f32 to vector<8x256xf32>
    %378 = arith.select %18, %376, %377 : vector<8x256xi1>, vector<8x256xf32>
    %379 = vector.extract_strided_slice %0 {offsets = [0, 11], sizes = [8, 1], strides = [1, 1]} : vector<8x36xf32> to vector<8x1xf32>
    %380 = vector.broadcast %379 : vector<8x1xf32> to vector<8x256xf32>
    %381 = arith.mulf %380, %378 : vector<8x256xf32>
    %382 = arith.addf %375, %381 : vector<8x256xf32>
    %c1_i32_111 = arith.constant 1 : i32
    %383 = tpu.dynamic_rotate %361 by %c1_i32_111 dim 1 : vector<8x256xf32>, i32 -> vector<8x256xf32>
    %cst_112 = arith.constant 0.000000e+00 : f32
    %384 = vector.broadcast %cst_112 : f32 to vector<8x256xf32>
    %385 = arith.select %20, %383, %384 : vector<8x256xi1>, vector<8x256xf32>
    %386 = vector.extract_strided_slice %0 {offsets = [0, 12], sizes = [8, 1], strides = [1, 1]} : vector<8x36xf32> to vector<8x1xf32>
    %387 = vector.broadcast %386 : vector<8x1xf32> to vector<8x256xf32>
    %388 = arith.mulf %387, %385 : vector<8x256xf32>
    %389 = arith.addf %382, %388 : vector<8x256xf32>
    %390 = vector.extract_strided_slice %0 {offsets = [0, 13], sizes = [8, 1], strides = [1, 1]} : vector<8x36xf32> to vector<8x1xf32>
    %391 = vector.broadcast %390 : vector<8x1xf32> to vector<8x256xf32>
    %392 = arith.mulf %391, %361 : vector<8x256xf32>
    %393 = arith.addf %389, %392 : vector<8x256xf32>
    %c255_i32_113 = arith.constant 255 : i32
    %394 = tpu.dynamic_rotate %361 by %c255_i32_113 dim 1 : vector<8x256xf32>, i32 -> vector<8x256xf32>
    %cst_114 = arith.constant 0.000000e+00 : f32
    %395 = vector.broadcast %cst_114 : f32 to vector<8x256xf32>
    %396 = arith.select %22, %394, %395 : vector<8x256xi1>, vector<8x256xf32>
    %397 = vector.extract_strided_slice %0 {offsets = [0, 14], sizes = [8, 1], strides = [1, 1]} : vector<8x36xf32> to vector<8x1xf32>
    %398 = vector.broadcast %397 : vector<8x1xf32> to vector<8x256xf32>
    %399 = arith.mulf %398, %396 : vector<8x256xf32>
    %400 = arith.addf %393, %399 : vector<8x256xf32>
    %c241_i32_115 = arith.constant 241 : i32
    %401 = tpu.dynamic_rotate %361 by %c241_i32_115 dim 1 : vector<8x256xf32>, i32 -> vector<8x256xf32>
    %cst_116 = arith.constant 0.000000e+00 : f32
    %402 = vector.broadcast %cst_116 : f32 to vector<8x256xf32>
    %403 = arith.select %27, %401, %402 : vector<8x256xi1>, vector<8x256xf32>
    %404 = vector.extract_strided_slice %0 {offsets = [0, 15], sizes = [8, 1], strides = [1, 1]} : vector<8x36xf32> to vector<8x1xf32>
    %405 = vector.broadcast %404 : vector<8x1xf32> to vector<8x256xf32>
    %406 = arith.mulf %405, %403 : vector<8x256xf32>
    %407 = arith.addf %400, %406 : vector<8x256xf32>
    %c240_i32_117 = arith.constant 240 : i32
    %408 = tpu.dynamic_rotate %361 by %c240_i32_117 dim 1 : vector<8x256xf32>, i32 -> vector<8x256xf32>
    %cst_118 = arith.constant 0.000000e+00 : f32
    %409 = vector.broadcast %cst_118 : f32 to vector<8x256xf32>
    %410 = arith.select %29, %408, %409 : vector<8x256xi1>, vector<8x256xf32>
    %411 = vector.extract_strided_slice %0 {offsets = [0, 16], sizes = [8, 1], strides = [1, 1]} : vector<8x36xf32> to vector<8x1xf32>
    %412 = vector.broadcast %411 : vector<8x1xf32> to vector<8x256xf32>
    %413 = arith.mulf %412, %410 : vector<8x256xf32>
    %414 = arith.addf %407, %413 : vector<8x256xf32>
    %c239_i32_119 = arith.constant 239 : i32
    %415 = tpu.dynamic_rotate %361 by %c239_i32_119 dim 1 : vector<8x256xf32>, i32 -> vector<8x256xf32>
    %cst_120 = arith.constant 0.000000e+00 : f32
    %416 = vector.broadcast %cst_120 : f32 to vector<8x256xf32>
    %417 = arith.select %34, %415, %416 : vector<8x256xi1>, vector<8x256xf32>
    %418 = vector.extract_strided_slice %0 {offsets = [0, 17], sizes = [8, 1], strides = [1, 1]} : vector<8x36xf32> to vector<8x1xf32>
    %419 = vector.broadcast %418 : vector<8x1xf32> to vector<8x256xf32>
    %420 = arith.mulf %419, %417 : vector<8x256xf32>
    %421 = arith.addf %414, %420 : vector<8x256xf32>
    %c1_121 = arith.constant 1 : index
    %c2_122 = arith.constant 2 : index
    %c0_123 = arith.constant 0 : index
    %422 = vector.load %arg1[%c1_121, %c2_122, %c0_123] : memref<2x4x256xf32, #tpu.memory_space<vmem>>, vector<1x1x256xf32>
    %423 = vector.shape_cast %422 : vector<1x1x256xf32> to vector<1x256xf32>
    %424 = vector.shape_cast %423 : vector<1x256xf32> to vector<1x256xf32>
    %425 = vector.broadcast %424 : vector<1x256xf32> to vector<8x256xf32>
    %c17_i32_124 = arith.constant 17 : i32
    %426 = tpu.dynamic_rotate %425 by %c17_i32_124 dim 1 : vector<8x256xf32>, i32 -> vector<8x256xf32>
    %cst_125 = arith.constant 0.000000e+00 : f32
    %427 = vector.broadcast %cst_125 : f32 to vector<8x256xf32>
    %428 = arith.select %11, %426, %427 : vector<8x256xi1>, vector<8x256xf32>
    %429 = vector.extract_strided_slice %0 {offsets = [0, 18], sizes = [8, 1], strides = [1, 1]} : vector<8x36xf32> to vector<8x1xf32>
    %430 = vector.broadcast %429 : vector<8x1xf32> to vector<8x256xf32>
    %431 = arith.mulf %430, %428 : vector<8x256xf32>
    %432 = arith.addf %421, %431 : vector<8x256xf32>
    %c16_i32_126 = arith.constant 16 : i32
    %433 = tpu.dynamic_rotate %425 by %c16_i32_126 dim 1 : vector<8x256xf32>, i32 -> vector<8x256xf32>
    %cst_127 = arith.constant 0.000000e+00 : f32
    %434 = vector.broadcast %cst_127 : f32 to vector<8x256xf32>
    %435 = arith.select %13, %433, %434 : vector<8x256xi1>, vector<8x256xf32>
    %436 = vector.extract_strided_slice %0 {offsets = [0, 19], sizes = [8, 1], strides = [1, 1]} : vector<8x36xf32> to vector<8x1xf32>
    %437 = vector.broadcast %436 : vector<8x1xf32> to vector<8x256xf32>
    %438 = arith.mulf %437, %435 : vector<8x256xf32>
    %439 = arith.addf %432, %438 : vector<8x256xf32>
    %c15_i32_128 = arith.constant 15 : i32
    %440 = tpu.dynamic_rotate %425 by %c15_i32_128 dim 1 : vector<8x256xf32>, i32 -> vector<8x256xf32>
    %cst_129 = arith.constant 0.000000e+00 : f32
    %441 = vector.broadcast %cst_129 : f32 to vector<8x256xf32>
    %442 = arith.select %18, %440, %441 : vector<8x256xi1>, vector<8x256xf32>
    %443 = vector.extract_strided_slice %0 {offsets = [0, 20], sizes = [8, 1], strides = [1, 1]} : vector<8x36xf32> to vector<8x1xf32>
    %444 = vector.broadcast %443 : vector<8x1xf32> to vector<8x256xf32>
    %445 = arith.mulf %444, %442 : vector<8x256xf32>
    %446 = arith.addf %439, %445 : vector<8x256xf32>
    %c1_i32_130 = arith.constant 1 : i32
    %447 = tpu.dynamic_rotate %425 by %c1_i32_130 dim 1 : vector<8x256xf32>, i32 -> vector<8x256xf32>
    %cst_131 = arith.constant 0.000000e+00 : f32
    %448 = vector.broadcast %cst_131 : f32 to vector<8x256xf32>
    %449 = arith.select %20, %447, %448 : vector<8x256xi1>, vector<8x256xf32>
    %450 = vector.extract_strided_slice %0 {offsets = [0, 21], sizes = [8, 1], strides = [1, 1]} : vector<8x36xf32> to vector<8x1xf32>
    %451 = vector.broadcast %450 : vector<8x1xf32> to vector<8x256xf32>
    %452 = arith.mulf %451, %449 : vector<8x256xf32>
    %453 = arith.addf %446, %452 : vector<8x256xf32>
    %454 = vector.extract_strided_slice %0 {offsets = [0, 22], sizes = [8, 1], strides = [1, 1]} : vector<8x36xf32> to vector<8x1xf32>
    %455 = vector.broadcast %454 : vector<8x1xf32> to vector<8x256xf32>
    %456 = arith.mulf %455, %425 : vector<8x256xf32>
    %457 = arith.addf %453, %456 : vector<8x256xf32>
    %c255_i32_132 = arith.constant 255 : i32
    %458 = tpu.dynamic_rotate %425 by %c255_i32_132 dim 1 : vector<8x256xf32>, i32 -> vector<8x256xf32>
    %cst_133 = arith.constant 0.000000e+00 : f32
    %459 = vector.broadcast %cst_133 : f32 to vector<8x256xf32>
    %460 = arith.select %22, %458, %459 : vector<8x256xi1>, vector<8x256xf32>
    %461 = vector.extract_strided_slice %0 {offsets = [0, 23], sizes = [8, 1], strides = [1, 1]} : vector<8x36xf32> to vector<8x1xf32>
    %462 = vector.broadcast %461 : vector<8x1xf32> to vector<8x256xf32>
    %463 = arith.mulf %462, %460 : vector<8x256xf32>
    %464 = arith.addf %457, %463 : vector<8x256xf32>
    %c241_i32_134 = arith.constant 241 : i32
    %465 = tpu.dynamic_rotate %425 by %c241_i32_134 dim 1 : vector<8x256xf32>, i32 -> vector<8x256xf32>
    %cst_135 = arith.constant 0.000000e+00 : f32
    %466 = vector.broadcast %cst_135 : f32 to vector<8x256xf32>
    %467 = arith.select %27, %465, %466 : vector<8x256xi1>, vector<8x256xf32>
    %468 = vector.extract_strided_slice %0 {offsets = [0, 24], sizes = [8, 1], strides = [1, 1]} : vector<8x36xf32> to vector<8x1xf32>
    %469 = vector.broadcast %468 : vector<8x1xf32> to vector<8x256xf32>
    %470 = arith.mulf %469, %467 : vector<8x256xf32>
    %471 = arith.addf %464, %470 : vector<8x256xf32>
    %c240_i32_136 = arith.constant 240 : i32
    %472 = tpu.dynamic_rotate %425 by %c240_i32_136 dim 1 : vector<8x256xf32>, i32 -> vector<8x256xf32>
    %cst_137 = arith.constant 0.000000e+00 : f32
    %473 = vector.broadcast %cst_137 : f32 to vector<8x256xf32>
    %474 = arith.select %29, %472, %473 : vector<8x256xi1>, vector<8x256xf32>
    %475 = vector.extract_strided_slice %0 {offsets = [0, 25], sizes = [8, 1], strides = [1, 1]} : vector<8x36xf32> to vector<8x1xf32>
    %476 = vector.broadcast %475 : vector<8x1xf32> to vector<8x256xf32>
    %477 = arith.mulf %476, %474 : vector<8x256xf32>
    %478 = arith.addf %471, %477 : vector<8x256xf32>
    %c239_i32_138 = arith.constant 239 : i32
    %479 = tpu.dynamic_rotate %425 by %c239_i32_138 dim 1 : vector<8x256xf32>, i32 -> vector<8x256xf32>
    %cst_139 = arith.constant 0.000000e+00 : f32
    %480 = vector.broadcast %cst_139 : f32 to vector<8x256xf32>
    %481 = arith.select %34, %479, %480 : vector<8x256xi1>, vector<8x256xf32>
    %482 = vector.extract_strided_slice %0 {offsets = [0, 26], sizes = [8, 1], strides = [1, 1]} : vector<8x36xf32> to vector<8x1xf32>
    %483 = vector.broadcast %482 : vector<8x1xf32> to vector<8x256xf32>
    %484 = arith.mulf %483, %481 : vector<8x256xf32>
    %485 = arith.addf %478, %484 : vector<8x256xf32>
    %c1_140 = arith.constant 1 : index
    %c3_141 = arith.constant 3 : index
    %c0_142 = arith.constant 0 : index
    %486 = vector.load %arg1[%c1_140, %c3_141, %c0_142] : memref<2x4x256xf32, #tpu.memory_space<vmem>>, vector<1x1x256xf32>
    %487 = vector.shape_cast %486 : vector<1x1x256xf32> to vector<1x256xf32>
    %488 = vector.shape_cast %487 : vector<1x256xf32> to vector<1x256xf32>
    %489 = vector.broadcast %488 : vector<1x256xf32> to vector<8x256xf32>
    %c17_i32_143 = arith.constant 17 : i32
    %490 = tpu.dynamic_rotate %489 by %c17_i32_143 dim 1 : vector<8x256xf32>, i32 -> vector<8x256xf32>
    %cst_144 = arith.constant 0.000000e+00 : f32
    %491 = vector.broadcast %cst_144 : f32 to vector<8x256xf32>
    %492 = arith.select %11, %490, %491 : vector<8x256xi1>, vector<8x256xf32>
    %493 = vector.extract_strided_slice %0 {offsets = [0, 27], sizes = [8, 1], strides = [1, 1]} : vector<8x36xf32> to vector<8x1xf32>
    %494 = vector.broadcast %493 : vector<8x1xf32> to vector<8x256xf32>
    %495 = arith.mulf %494, %492 : vector<8x256xf32>
    %496 = arith.addf %485, %495 : vector<8x256xf32>
    %c16_i32_145 = arith.constant 16 : i32
    %497 = tpu.dynamic_rotate %489 by %c16_i32_145 dim 1 : vector<8x256xf32>, i32 -> vector<8x256xf32>
    %cst_146 = arith.constant 0.000000e+00 : f32
    %498 = vector.broadcast %cst_146 : f32 to vector<8x256xf32>
    %499 = arith.select %13, %497, %498 : vector<8x256xi1>, vector<8x256xf32>
    %500 = vector.extract_strided_slice %0 {offsets = [0, 28], sizes = [8, 1], strides = [1, 1]} : vector<8x36xf32> to vector<8x1xf32>
    %501 = vector.broadcast %500 : vector<8x1xf32> to vector<8x256xf32>
    %502 = arith.mulf %501, %499 : vector<8x256xf32>
    %503 = arith.addf %496, %502 : vector<8x256xf32>
    %c15_i32_147 = arith.constant 15 : i32
    %504 = tpu.dynamic_rotate %489 by %c15_i32_147 dim 1 : vector<8x256xf32>, i32 -> vector<8x256xf32>
    %cst_148 = arith.constant 0.000000e+00 : f32
    %505 = vector.broadcast %cst_148 : f32 to vector<8x256xf32>
    %506 = arith.select %18, %504, %505 : vector<8x256xi1>, vector<8x256xf32>
    %507 = vector.extract_strided_slice %0 {offsets = [0, 29], sizes = [8, 1], strides = [1, 1]} : vector<8x36xf32> to vector<8x1xf32>
    %508 = vector.broadcast %507 : vector<8x1xf32> to vector<8x256xf32>
    %509 = arith.mulf %508, %506 : vector<8x256xf32>
    %510 = arith.addf %503, %509 : vector<8x256xf32>
    %c1_i32_149 = arith.constant 1 : i32
    %511 = tpu.dynamic_rotate %489 by %c1_i32_149 dim 1 : vector<8x256xf32>, i32 -> vector<8x256xf32>
    %cst_150 = arith.constant 0.000000e+00 : f32
    %512 = vector.broadcast %cst_150 : f32 to vector<8x256xf32>
    %513 = arith.select %20, %511, %512 : vector<8x256xi1>, vector<8x256xf32>
    %514 = vector.extract_strided_slice %0 {offsets = [0, 30], sizes = [8, 1], strides = [1, 1]} : vector<8x36xf32> to vector<8x1xf32>
    %515 = vector.broadcast %514 : vector<8x1xf32> to vector<8x256xf32>
    %516 = arith.mulf %515, %513 : vector<8x256xf32>
    %517 = arith.addf %510, %516 : vector<8x256xf32>
    %518 = vector.extract_strided_slice %0 {offsets = [0, 31], sizes = [8, 1], strides = [1, 1]} : vector<8x36xf32> to vector<8x1xf32>
    %519 = vector.broadcast %518 : vector<8x1xf32> to vector<8x256xf32>
    %520 = arith.mulf %519, %489 : vector<8x256xf32>
    %521 = arith.addf %517, %520 : vector<8x256xf32>
    %c255_i32_151 = arith.constant 255 : i32
    %522 = tpu.dynamic_rotate %489 by %c255_i32_151 dim 1 : vector<8x256xf32>, i32 -> vector<8x256xf32>
    %cst_152 = arith.constant 0.000000e+00 : f32
    %523 = vector.broadcast %cst_152 : f32 to vector<8x256xf32>
    %524 = arith.select %22, %522, %523 : vector<8x256xi1>, vector<8x256xf32>
    %525 = vector.extract_strided_slice %0 {offsets = [0, 32], sizes = [8, 1], strides = [1, 1]} : vector<8x36xf32> to vector<8x1xf32>
    %526 = vector.broadcast %525 : vector<8x1xf32> to vector<8x256xf32>
    %527 = arith.mulf %526, %524 : vector<8x256xf32>
    %528 = arith.addf %521, %527 : vector<8x256xf32>
    %c241_i32_153 = arith.constant 241 : i32
    %529 = tpu.dynamic_rotate %489 by %c241_i32_153 dim 1 : vector<8x256xf32>, i32 -> vector<8x256xf32>
    %cst_154 = arith.constant 0.000000e+00 : f32
    %530 = vector.broadcast %cst_154 : f32 to vector<8x256xf32>
    %531 = arith.select %27, %529, %530 : vector<8x256xi1>, vector<8x256xf32>
    %532 = vector.extract_strided_slice %0 {offsets = [0, 33], sizes = [8, 1], strides = [1, 1]} : vector<8x36xf32> to vector<8x1xf32>
    %533 = vector.broadcast %532 : vector<8x1xf32> to vector<8x256xf32>
    %534 = arith.mulf %533, %531 : vector<8x256xf32>
    %535 = arith.addf %528, %534 : vector<8x256xf32>
    %c240_i32_155 = arith.constant 240 : i32
    %536 = tpu.dynamic_rotate %489 by %c240_i32_155 dim 1 : vector<8x256xf32>, i32 -> vector<8x256xf32>
    %cst_156 = arith.constant 0.000000e+00 : f32
    %537 = vector.broadcast %cst_156 : f32 to vector<8x256xf32>
    %538 = arith.select %29, %536, %537 : vector<8x256xi1>, vector<8x256xf32>
    %539 = vector.extract_strided_slice %0 {offsets = [0, 34], sizes = [8, 1], strides = [1, 1]} : vector<8x36xf32> to vector<8x1xf32>
    %540 = vector.broadcast %539 : vector<8x1xf32> to vector<8x256xf32>
    %541 = arith.mulf %540, %538 : vector<8x256xf32>
    %542 = arith.addf %535, %541 : vector<8x256xf32>
    %c239_i32_157 = arith.constant 239 : i32
    %543 = tpu.dynamic_rotate %489 by %c239_i32_157 dim 1 : vector<8x256xf32>, i32 -> vector<8x256xf32>
    %cst_158 = arith.constant 0.000000e+00 : f32
    %544 = vector.broadcast %cst_158 : f32 to vector<8x256xf32>
    %545 = arith.select %34, %543, %544 : vector<8x256xi1>, vector<8x256xf32>
    %546 = vector.extract_strided_slice %0 {offsets = [0, 35], sizes = [8, 1], strides = [1, 1]} : vector<8x36xf32> to vector<8x1xf32>
    %547 = vector.broadcast %546 : vector<8x1xf32> to vector<8x256xf32>
    %548 = arith.mulf %547, %545 : vector<8x256xf32>
    %549 = arith.addf %542, %548 : vector<8x256xf32>
    %c1_159 = arith.constant 1 : index
    %c0_160 = arith.constant 0 : index
    %c0_161 = arith.constant 0 : index
    %550 = vector.load %arg4[%c1_159, %c0_160, %c0_161] : memref<2x8x256xf32, #tpu.memory_space<vmem>>, vector<1x8x256xf32>
    %551 = vector.shape_cast %550 : vector<1x8x256xf32> to vector<8x256xf32>
    %552 = vector.shape_cast %549 : vector<8x256xf32> to vector<1x8x256xf32>
    tpu.vector_store %arg4[%c1_159, %c0_160, %c0_161], %552 {strides = array<i32>} : memref<2x8x256xf32, #tpu.memory_space<vmem>>, vector<1x8x256xf32>,
    return
  }
  func.func @transform_0(%arg0: i32) -> (i32, i32, i32) {
    %c0_i32 = arith.constant 0 : i32
    %c0_i32_0 = arith.constant 0 : i32
    %c0_i32_1 = arith.constant 0 : i32
    return %arg0, %c0_i32, %c0_i32_0 : i32, i32, i32
  }
  func.func @transform_1(%arg0: i32) -> (i32, i32) {
    %c0_i32 = arith.constant 0 : i32
    %c0_i32_0 = arith.constant 0 : i32
    %c0_i32_1 = arith.constant 0 : i32
    return %c0_i32, %c0_i32_0 : i32, i32
  }
  func.func @transform_2(%arg0: i32) -> (i32, i32) {
    %c0_i32 = arith.constant 0 : i32
    %c0_i32_0 = arith.constant 0 : i32
    %c0_i32_1 = arith.constant 0 : i32
    return %c0_i32, %c0_i32_0 : i32, i32
  }
  func.func @transform_3(%arg0: i32) -> (i32, i32, i32) {
    %c0_i32 = arith.constant 0 : i32
    %c0_i32_0 = arith.constant 0 : i32
    %c0_i32_1 = arith.constant 0 : i32
    return %arg0, %c0_i32, %c0_i32_0 : i32, i32, i32
  }
}

</mosaic_0001>

<bundles_post_ra>
// kernel: tpu_custom_call.1
= control target key start
LH: loop header
LB: loop body
LE: loop exit
PB: predicated region body
PF: predicated region fallthrough
CT: control target
= control target key end

     0   :  { %8 = vsyncpa [#allocation3], 0  ;;  %s2807_s0 = inlined_call_operand.hbm [shape: f32[2,4,256], index: 0, kind: input, shape index: {}]   ;;  %s2808_s1 = inlined_call_operand.vmem [shape: f32[8,36], index: 1, kind: input, shape index: {}]   ;;  %s2809_s2 = inlined_call_operand.vmem [shape: f32[8,1], index: 2, kind: input, shape index: {}]   ;;  %s2810_s3 = inlined_call_operand.hbm [shape: f32[2,8,256], index: 3, kind: output, shape index: {}]  }
   0x1   :  { %9 = vsyncpa [#allocation4], 0  ;;  %s1274_s12 = smov [#allocation2]   ;;  %s1226_s16 = scalar_lea.hbm %s2807_s0, 256 }
   0x2   :  { %s15_s13 = sshll.u32 %s1274_s12, 4  ;;  %p1227_p0 = scmp.ne.s32.totalorder %s2807_s0, %s1226_s16  ;;  %s16_s13 = int_to_ptr.vmem [resolvable:$true] %s15_s13 }
   0x3   :  { %p1230_p1 = scmp.lt.u32.totalorder %s1226_s16, %s2807_s0 }
   0x5   :  { %p1232_p2 = pnand %p1230_p1, %p1227_p0 }
   0x7   :  { %1235 = shalt.err (!%p1232_p2)
}
   0x8   :  { %s1236_s21 = scalar_lea.vmem %s16_s13, 256  ;;  %p1241_p4 = scmp.lt.s32.totalorder %s16_s13, %s16_s13 }
   0x9   :  { %p1237_p3 = scmp.ne.s32.totalorder %s16_s13, %s1236_s21  ;;  %p1242_p5 = scmp.lt.s32.totalorder %s1236_s21, %s1236_s21 }
   0xb   :  { %p1243_p6 = por %p1242_p5, %p1241_p4 }
   0xd   :  { %p1244_p7 = pnand %p1243_p6, %p1237_p3 }
   0xf   :  { %1247 = shalt.err (!%p1244_p7)
}
  0x10   :  { %s1275_s22 = smov 128   ;;  %s1276_s23 = smov 8  }
  0x11   :  { %21 = dma.hbm_to_vmem [thread:$0]  %s2807_s0, 256, %s16_s13, [#allocation3], %s1275_s22, %s1275_s22, %s1276_s23  }
  0x12   :  { %1270 = dma.done.wait [#allocation3], 256  }
  0x13   :  { %1271 = vsyncadd [#allocation3], 4294967040  ;;  %v36_v0 = vlaneseq  ;;  %v1277_v1 = vmov 0   ;;  %v30_v5 = vld [vmem:[%s2809_s2] sm:$0xff]  ;;  %s1278_s0 = smov 17   ;;  %v1279_v10 = vmov 1  }
  0x14   :  { %1188 = vset.pattern.permute.xlu1 %v1277_v1  ;;  %1187 = vset.pattern.permute.xlu0 %v1277_v1  ;;  %v1366_v6 = vld [vmem:[%s2808_s1] sm:$0xff]  ;;  %v1280_v11 = vmov 4   ;;  %s1281_s2 = smov 16   ;;  %s1282_s30 = smov 15   ;;  %v1283_v12 = vmov 2   ;;  %v1285_v13 = vmov 3  }
  0x15   :  { %v60_v2 = vshrl.u32 %v36_v0, 7  ;;  %v57_v7 = vld [vmem:[#allocation2] ss:$4 sm:$0x3]  ;;  %33 = vperm.xlu0 %1187, %v30_v5   ;;  %80 = vperm.xlu1 %1188, %v1366_v6   ;;  %s1284_s4 = smov 1   ;;  %s1286_s5 = smov 127  }
  0x16   :  { %v1287_v14 = vmov 6   ;;  %s1288_s6 = smov 113   ;;  %v1289_v15 = vmov 5   ;;  %v1290_v16 = vmov 7   ;;  %v1291_v17 = vmov 13   ;;  %s1293_s7 = smov 112  }
  0x17   :  { %v1356_v3 = vsub.s32 0, %v60_v2  ;;  %v1358_v4 = vsub.s32 1, %v60_v2  ;;  %v1292_v18 = vmov 8   ;;  %v1294_v19 = vmov 9   ;;  %s1295_s8 = smov 111  }
  0x18   :  { %v1296_v20 = vmov 10   ;;  %v215_v21 = vld [vmem:[#allocation2 + $0x1] ss:$4 sm:$0x3]  ;;  %v1297_v23 = vmov 11   ;;  %v1298_v25 = vmov 12  }
  0x19   :  { %v1370_v8 = vrot.slane %v57_v7, %v1356_v3  ;;  %v1373_v9 = vrot.slane %v57_v7, %v1358_v4  ;;  %1189 = vset.pattern.permute.xlu0 %v1279_v10  ;;  %1192 = vset.pattern.permute.xlu1 %v1280_v11  ;;  %v1418_v22 = vrot.slane %v215_v21, %v1356_v3  ;;  %v1299_v26 = vmov 15   ;;  %v364_v33 = vld [vmem:[#allocation2 + $0x2] ss:$4 sm:$0x3] }
  0x1a   :  { %v1424_v24 = vrot.slane %v215_v21, %v1358_v4  ;;  %v1300_v27 = vmov 16   ;;  %v1301_v28 = vmov 17   ;;  %v1302_v29 = vmov 18   ;;  %v513_v53 = vld [vmem:[#allocation2 + $0x3] ss:$4 sm:$0x3] }
  0x1b   :  { %69 = vrot.lane.b32.xlu0 %v1370_v8, %s1278_s0  ;;  %71 = vrot.lane.b32.xlu1 %v1373_v9, %s1278_s0  ;;  %2867 = vst [vmem:[#allocation8_spill] sm:$0xff] %v1418_v22  ;;  %v1303_v30 = vmov 19   ;;  %v1304_v31 = vmov 14   ;;  %v1305_v32 = vmov 20   ;;  %v1306_v34 = vmov 21  }
  0x1c   :  { %2868 = vst [vmem:[#allocation9_spill] sm:$0xff] %v1424_v24  ;;  %v1307_v35 = vmov 22   ;;  %v1459_v36 = vrot.slane %v364_v33, %v1358_v4  ;;  %v1466_v37 = vrot.slane %v364_v33, %v1356_v3  ;;  %v1308_v38 = vmov 24   ;;  %v1549_v10 = vld [vmem:[#allocation2 + $0x8] ss:$4 sm:$0x3] }
  0x1d   :  { %v1309_v39 = vmov 25   ;;  %v1310_v41 = vmov 26   ;;  %v1311_v45 = vmov 27   ;;  %v1312_v48 = vmov 28  }
  0x1e   :  { %2869 = vst [vmem:[#allocation10_spill] sm:$0xff] %v1459_v36  ;;  %2870 = vst [vmem:[#allocation11_spill] sm:$0xff] %v1466_v37  ;;  %v1313_v51 = vmov 29   ;;  %v1314_v55 = vmov 30   ;;  %v1520_v57 = vrot.slane %v513_v53, %v1358_v4  ;;  %v1531_v60 = vrot.slane %v513_v53, %v1356_v3 }
  0x1f   :  { %87 = vrot.lane.b32.xlu0 %v1370_v8, %s1281_s2  ;;  %89 = vrot.lane.b32.xlu1 %v1373_v9, %s1281_s2  ;;  %v1315_v61 = vmov 33   ;;  %v1316_v5 = vmov 23   ;;  %v1317_v11 = vmov 34  }
  0x23   :  { %97 = vperm.xlu0 %1189, %v1366_v6   ;;  %104 = vrot.lane.b32.xlu1 %v1370_v8, %s1282_s30 }
  0x27   :  { %1190 = vset.pattern.permute.xlu0 %v1283_v12  ;;  %106 = vrot.lane.b32.xlu1 %v1373_v9, %s1282_s30 }
  0x28   :  { %114 = vperm.xlu0 %1190, %v1366_v6  }
  0x2b   :  { %121 = vrot.lane.b32.xlu1 %v1370_v8, %s1284_s4 }
  0x2c   :  { %1191 = vset.pattern.permute.xlu0 %v1285_v13  ;;  %v1557_v13 = vrot.slane %v1549_v10, %v1358_v4 }
  0x2d   :  { %131 = vperm.xlu0 %1191, %v1366_v6  }
  0x2e   :  { %2873 = vst [vmem:[#allocation14_spill] sm:$0xff] %v1557_v13 }
  0x2f   :  { %123 = vrot.lane.b32.xlu1 %v1373_v9, %s1284_s4 }
  0x31   :  { %148 = vrot.lane.b32.xlu0 %v1373_v9, %s1286_s5 }
  0x32   :  { %1194 = vset.pattern.permute.xlu0 %v1287_v14 }
  0x33   :  { %139 = vperm.xlu1 %1192, %v1366_v6  }
  0x35   :  { %163 = vrot.lane.b32.xlu0 %v1370_v8, %s1288_s6 }
  0x37   :  { %146 = vrot.lane.b32.xlu1 %v1370_v8, %s1286_s5 }
  0x38   :  { %1193 = vset.pattern.permute.xlu1 %v1289_v15 }
  0x39   :  { %173 = vperm.xlu0 %1194, %v1366_v6  }
  0x3b   :  { %156 = vperm.xlu1 %1193, %v1366_v6  }
  0x3d   :  { %1195 = vset.pattern.permute.xlu0 %v1290_v16  ;;  %v1318_v16 = vmov 31  }
  0x3e   :  { %190 = vperm.xlu0 %1195, %v1366_v6  }
  0x3f   :  { %165 = vrot.lane.b32.xlu1 %v1373_v9, %s1288_s6 }
  0x40   :  { %1201 = vset.pattern.permute.xlu1 %v1291_v17 }
  0x42   :  { %1196 = vset.pattern.permute.xlu0 %v1292_v18 }
  0x43   :  { %207 = vperm.xlu0 %1196, %v1366_v6   ;;  %180 = vrot.lane.b32.xlu1 %v1370_v8, %s1293_s7 }
  0x47   :  { %1197 = vset.pattern.permute.xlu0 %v1294_v19  ;;  %182 = vrot.lane.b32.xlu1 %v1373_v9, %s1293_s7 }
  0x48   :  { %236 = vperm.xlu0 %1197, %v1366_v6  }
  0x4b   :  { %197 = vrot.lane.b32.xlu1 %v1370_v8, %s1295_s8 }
  0x4c   :  { %1198 = vset.pattern.permute.xlu0 %v1296_v20 }
  0x4d   :  { %252 = vperm.xlu0 %1198, %v1366_v6  }
  0x4f   :  { %199 = vrot.lane.b32.xlu1 %v1373_v9, %s1295_s8 }
  0x51   :  { %1199 = vset.pattern.permute.xlu0 %v1297_v23 }
  0x52   :  { %268 = vperm.xlu0 %1199, %v1366_v6  }
  0x53   :  { %227 = vrot.lane.b32.xlu1 %v1418_v22, %s1278_s0 }
  0x56   :  { %1200 = vset.pattern.permute.xlu0 %v1298_v25 }
  0x57   :  { %284 = vperm.xlu0 %1200, %v1366_v6   ;;  %229 = vrot.lane.b32.xlu1 %v1424_v24, %s1278_s0 }
  0x5b   :  { %301 = vrot.lane.b32.xlu0 %v1424_v24, %s1286_s5  ;;  %243 = vrot.lane.b32.xlu1 %v1418_v22, %s1281_s2 }
  0x5c   :  { %1203 = vset.pattern.permute.xlu0 %v1299_v26 }
  0x5f   :  { %315 = vrot.lane.b32.xlu0 %v1418_v22, %s1288_s6  ;;  %245 = vrot.lane.b32.xlu1 %v1424_v24, %s1281_s2 }
  0x63   :  { %324 = vperm.xlu0 %1203, %v1366_v6   ;;  %259 = vrot.lane.b32.xlu1 %v1418_v22, %s1282_s30 }
  0x67   :  { %1204 = vset.pattern.permute.xlu0 %v1300_v27  ;;  %261 = vrot.lane.b32.xlu1 %v1424_v24, %s1282_s30 }
  0x68   :  { %340 = vperm.xlu0 %1204, %v1366_v6  }
  0x6b   :  { %275 = vrot.lane.b32.xlu1 %v1418_v22, %s1284_s4 }
  0x6c   :  { %1205 = vset.pattern.permute.xlu0 %v1301_v28 }
  0x6d   :  { %356 = vperm.xlu0 %1205, %v1366_v6  }
  0x6f   :  { %277 = vrot.lane.b32.xlu1 %v1424_v24, %s1284_s4 }
  0x71   :  { %1206 = vset.pattern.permute.xlu0 %v1302_v29 }
  0x72   :  { %385 = vperm.xlu0 %1206, %v1366_v6  }
  0x73   :  { %292 = vperm.xlu1 %1201, %v1366_v6  }
  0x76   :  { %1207 = vset.pattern.permute.xlu0 %v1303_v30  ;;  %v1613_v30 = vld [vmem:[#allocation2 + $0x9] ss:$4 sm:$0x3] }
  0x77   :  { %401 = vperm.xlu0 %1207, %v1366_v6   ;;  %299 = vrot.lane.b32.xlu1 %v1418_v22, %s1286_s5  ;;  %2874 = vst [vmem:[#allocation15_spill] sm:$0xff] %v1613_v30  ;;  %v1625_v33 = vrot.slane %v1613_v30, %v1358_v4 }
  0x78   :  { %1202 = vset.pattern.permute.xlu1 %v1304_v31 }
  0x79   :  { %2875 = vst [vmem:[#allocation16_spill] sm:$0xff] %v1625_v33 }
  0x7b   :  { %1208 = vset.pattern.permute.xlu0 %v1305_v32  ;;  %308 = vperm.xlu1 %1202, %v1366_v6  }
  0x7c   :  { %417 = vperm.xlu0 %1208, %v1366_v6  }
  0x7f   :  { %317 = vrot.lane.b32.xlu1 %v1424_v24, %s1288_s6 }
  0x80   :  { %1209 = vset.pattern.permute.xlu0 %v1306_v34  ;;  %1210 = vset.pattern.permute.xlu1 %v1307_v35 }
  0x81   :  { %433 = vperm.xlu0 %1209, %v1366_v6  }
  0x83   :  { %331 = vrot.lane.b32.xlu1 %v1418_v22, %s1293_s7 }
  0x85   :  { %450 = vrot.lane.b32.xlu0 %v1459_v36, %s1286_s5 }
  0x86   :  { %1212 = vset.pattern.permute.xlu0 %v1308_v38 }
  0x87   :  { %333 = vrot.lane.b32.xlu1 %v1424_v24, %s1293_s7 }
  0x89   :  { %464 = vrot.lane.b32.xlu0 %v1466_v37, %s1288_s6 }
  0x8b   :  { %347 = vrot.lane.b32.xlu1 %v1418_v22, %s1295_s8 }
  0x8d   :  { %473 = vperm.xlu0 %1212, %v1366_v6  }
  0x8f   :  { %349 = vrot.lane.b32.xlu1 %v1424_v24, %s1295_s8 }
  0x91   :  { %1213 = vset.pattern.permute.xlu0 %v1309_v39 }
  0x92   :  { %489 = vperm.xlu0 %1213, %v1366_v6  }
  0x93   :  { %376 = vrot.lane.b32.xlu1 %v1466_v37, %s1278_s0 }
  0x94   :  { %v1480_v40 = vpop.permute.xlu0 %33  ;;  %v1482_v42 = vpop.permute.xlu1 %80 }
  0x95   :  { %2871 = vst [vmem:[#allocation12_spill] sm:$0xff] %v1482_v42 }
  0x96   :  { %1214 = vset.pattern.permute.xlu0 %v1310_v41 }
  0x97   :  { %505 = vperm.xlu0 %1214, %v1366_v6   ;;  %378 = vrot.lane.b32.xlu1 %v1459_v36, %s1278_s0 }
  0x98   :  { %v1487_v43 = vpop.permute.xlu0 %69  ;;  %v1489_v44 = vpop.permute.xlu1 %71 }
  0x9b   :  { %1215 = vset.pattern.permute.xlu0 %v1311_v45  ;;  %392 = vrot.lane.b32.xlu1 %v1466_v37, %s1281_s2 }
  0x9c   :  { %534 = vperm.xlu0 %1215, %v1366_v6   ;;  %v1494_v46 = vpop.permute.xlu1 %89  ;;  %v1496_v47 = vpop.permute.xlu0 %87 }
  0x9f   :  { %394 = vrot.lane.b32.xlu1 %v1459_v36, %s1281_s2 }
  0xa0   :  { %1216 = vset.pattern.permute.xlu0 %v1312_v48  ;;  %v1501_v49 = vpop.permute.xlu1 %104 }
  0xa1   :  { %550 = vperm.xlu0 %1216, %v1366_v6  }
  0xa2   :  { %v1505_v50 = vpop.permute.xlu0 %97 }
  0xa3   :  { %408 = vrot.lane.b32.xlu1 %v1466_v37, %s1282_s30 }
  0xa4   :  { %v1508_v52 = vpop.permute.xlu1 %106 }
  0xa5   :  { %1217 = vset.pattern.permute.xlu0 %v1313_v51 }
  0xa6   :  { %566 = vperm.xlu0 %1217, %v1366_v6  }
  0xa7   :  { %410 = vrot.lane.b32.xlu1 %v1459_v36, %s1282_s30  ;;  %v1512_v54 = vpop.permute.xlu0 %114 }
  0xa8   :  { %2872 = vst [vmem:[#allocation13_spill] sm:$0xff] %v1512_v54  ;;  %v1514_v56 = vpop.permute.xlu1 %121 }
  0xaa   :  { %1218 = vset.pattern.permute.xlu0 %v1314_v55 }
  0xab   :  { %582 = vperm.xlu0 %1218, %v1366_v6   ;;  %424 = vrot.lane.b32.xlu1 %v1466_v37, %s1284_s4 }
  0xac   :  { %v1522_v58 = vpop.permute.xlu0 %131  ;;  %v1524_v59 = vpop.permute.xlu1 %123 }
  0xaf   :  { %599 = vrot.lane.b32.xlu0 %v1520_v57, %s1286_s5  ;;  %426 = vrot.lane.b32.xlu1 %v1459_v36, %s1284_s4 }
  0xb0   :  { %1221 = vset.pattern.permute.xlu0 %v1315_v61  ;;  %v1533_v62 = vpop.permute.xlu0 %148 }
  0xb2   :  { %v1535_v63 = vpop.permute.xlu1 %139 }
  0xb3   :  { %613 = vrot.lane.b32.xlu0 %v1531_v60, %s1288_s6  ;;  %441 = vperm.xlu1 %1210, %v1366_v6  }
  0xb4   :  { %v1540_v1 = vpop.permute.xlu0 %163 }
  0xb6   :  { %v1542_v2 = vpop.permute.xlu1 %146 }
  0xb7   :  { %622 = vperm.xlu0 %1221, %v1366_v6   ;;  %448 = vrot.lane.b32.xlu1 %v1466_v37, %s1286_s5 }
  0xb8   :  { %1211 = vset.pattern.permute.xlu1 %v1316_v5  ;;  %v1551_v12 = vpop.permute.xlu0 %173  ;;  %v1673_v5 = vand.u32 127, %v36_v0 }
  0xba   :  { %v1547_v7 = vpop.permute.xlu1 %156  ;;  %v39_v0 = vand.u32 15, %v1673_v5  ;;  %vm2841_vm0 = vcmp.ge.s32.totalorder %v1673_v5, 16  ;;  %vm2840_vm2 = vcmp.lt.s32.totalorder %v1673_v5, 17  ;;  %vm2866_vm5 = vcmp.lt.s32.totalorder %v1673_v5, 16 }
  0xbb   :  { %1222 = vset.pattern.permute.xlu0 %v1317_v11  ;;  %457 = vperm.xlu1 %1211, %v1366_v6   ;;  %vm2845_vm7 = vcmp.lt.s32.totalorder %v1673_v5, 15  ;;  %vm2838_vm8 = vcmp.lt.s32.totalorder %v1673_v5, 1  ;;  %vm150_vm11 = vcmp.lt.s32.totalorder %v1673_v5, 127  ;;  %vm2839_vm13 = vcmp.lt.s32.totalorder %v1673_v5, 113 }
  0xbc   :  { %638 = vperm.xlu0 %1222, %v1366_v6   ;;  %vm1702_vm1 = vcmp.ge.s32.totalorder %v39_v0, 1  ;;  %vm1736_vm6 = vcmp.lt.s32.totalorder %v39_v0, 15  ;;  %vm184_vm14 = vcmp.lt.s32.totalorder %v1673_v5, 112 }
  0xbd   :  { %v1561_v15 = vpop.permute.xlu0 %190  ;;  %vm1723_vm4 = vmand %vm2841_vm0, %vm1702_vm1 }
  0xbe   :  { %v1559_v14 = vpop.permute.xlu1 %165  ;;  %vm1766_vm10 = vmand %vm2841_vm0, %vm1736_vm6 }
  0xbf   :  { %466 = vrot.lane.b32.xlu1 %v1459_v36, %s1288_s6 }
  0xc0   :  { %678 = vrot.lane.b32.xlu0 %v1557_v13, %s1278_s0  ;;  %1219 = vset.pattern.permute.xlu1 %v1318_v16 }
  0xc2   :  { %v1567_v17 = vpop.permute.xlu1 %180  ;;  %v1569_v18 = vpop.permute.xlu0 %207 }
  0xc3   :  { %480 = vrot.lane.b32.xlu1 %v1466_v37, %s1293_s7 }
  0xc4   :  { %690 = vrot.lane.b32.xlu0 %v1557_v13, %s1281_s2 }
  0xc6   :  { %v1575_v19 = vpop.permute.xlu1 %182 }
  0xc7   :  { %v1577_v20 = vpop.permute.xlu0 %236  ;;  %482 = vrot.lane.b32.xlu1 %v1459_v36, %s1293_s7 }
  0xc8   :  { %702 = vrot.lane.b32.xlu0 %v1557_v13, %s1282_s30 }
  0xca   :  { %v1583_v21 = vpop.permute.xlu1 %197 }
  0xcb   :  { %496 = vrot.lane.b32.xlu1 %v1466_v37, %s1295_s8  ;;  %v1686_v37 = vld [vmem:[#allocation2 + $0xa] ss:$4 sm:$0x3] }
  0xcc   :  { %714 = vrot.lane.b32.xlu0 %v1557_v13, %s1284_s4  ;;  %v1589_v23 = vpop.permute.xlu0 %252  ;;  %2884 = vst [vmem:[#allocation25_spill] sm:$0xff] %v1686_v37 }
  0xce   :  { %v1591_v25 = vpop.permute.xlu1 %199 }
  0xcf   :  { %498 = vrot.lane.b32.xlu1 %v1459_v36, %s1295_s8  ;;  %v1319_v36 = vmov 32  }
  0xd0   :  { %730 = vrot.lane.b32.xlu0 %v1557_v13, %s1286_s5 }
  0xd1   :  { %v1597_v26 = vpop.permute.xlu0 %268 }
  0xd2   :  { %v1599_v27 = vpop.permute.xlu1 %227 }
  0xd3   :  { %525 = vrot.lane.b32.xlu1 %v1531_v60, %s1278_s0 }
  0xd4   :  { %742 = vrot.lane.b32.xlu0 %v1557_v13, %s1288_s6 }
  0xd6   :  { %v1605_v28 = vpop.permute.xlu1 %229  ;;  %v1607_v29 = vpop.permute.xlu0 %284 }
  0xd7   :  { %527 = vrot.lane.b32.xlu1 %v1520_v57, %s1278_s0 }
  0xd8   :  { %754 = vrot.lane.b32.xlu0 %v1557_v13, %s1293_s7 }
  0xda   :  { %v1615_v31 = vpop.permute.xlu1 %243  ;;  %v1617_v32 = vpop.permute.xlu0 %301 }
  0xdb   :  { %541 = vrot.lane.b32.xlu1 %v1531_v60, %s1281_s2 }
  0xdc   :  { %766 = vrot.lane.b32.xlu0 %v1557_v13, %s1295_s8  ;;  %v1684_v13 = vadd.s32 128, %v1673_v5 }
  0xde   :  { %v1627_v34 = vpop.permute.xlu1 %245  ;;  %v1629_v35 = vpop.permute.xlu0 %315  ;;  %v40_v30 = vand.u32 15, %v1684_v13  ;;  %vm52_vm12 = vcmp.lt.s32.totalorder %v1684_v13, 240 }
  0xdf   :  { %2876 = vst [vmem:[#allocation17_spill] sm:$0xff] %v1629_v35  ;;  %543 = vrot.lane.b32.xlu1 %v1520_v57, %s1281_s2 }
  0xe0   :  { %791 = vrot.lane.b32.xlu0 %v1625_v33, %s1278_s0  ;;  %vm1715_vm3 = vcmp.ge.s32.totalorder %v40_v30, 1  ;;  %vm1758_vm9 = vcmp.lt.s32.totalorder %v40_v30, 15  ;;  %v110_v30 = vsel %vm2845_vm7, %v1508_v52, %v1501_v49 }
  0xe1   :  { %vm1852_vm15 = vmand %vm52_vm12, %vm1715_vm3 }
  0xe2   :  { %v1635_v38 = vpop.permute.xlu1 %259  ;;  %v1637_v39 = vpop.permute.xlu0 %324 }
  0xe3   :  { %2877 = vst [vmem:[#allocation18_spill] sm:$0xff] %v1637_v39  ;;  %557 = vrot.lane.b32.xlu1 %v1531_v60, %s1282_s30 }
  0xe4   :  { %803 = vrot.lane.b32.xlu0 %v1625_v33, %s1281_s2 }
  0xe6   :  { %v1643_v41 = vpop.permute.xlu1 %261 }
  0xe7   :  { %v1645_v45 = vpop.permute.xlu0 %340  ;;  %559 = vrot.lane.b32.xlu1 %v1520_v57, %s1282_s30 }
  0xe8   :  { %2878 = vst [vmem:[#allocation19_spill] sm:$0xff] %v1645_v45  ;;  %815 = vrot.lane.b32.xlu0 %v1625_v33, %s1282_s30  ;;  %v75_v45 = vsel %vm2840_vm2, %v1489_v44, %v1487_v43 }
  0xe9   :  { %v76_v24 = vsel %vm1723_vm4, %v75_v45, 0.0 }
  0xea   :  { %v1651_v48 = vpop.permute.xlu1 %275  ;;  %v83_v22 = vmul.f32 %v1482_v42, %v76_v24 }
  0xeb   :  { %573 = vrot.lane.b32.xlu1 %v1531_v60, %s1284_s4 }
  0xec   :  { %v1655_v51 = vpop.permute.xlu0 %356  ;;  %827 = vrot.lane.b32.xlu0 %v1625_v33, %s1284_s4 }
  0xed   :  { %2879 = vst [vmem:[#allocation20_spill] sm:$0xff] %v1655_v51 }
  0xee   :  { %v1659_v53 = vpop.permute.xlu1 %277 }
  0xef   :  { %575 = vrot.lane.b32.xlu1 %v1520_v57, %s1284_s4 }
  0xf0   :  { %843 = vrot.lane.b32.xlu0 %v1625_v33, %s1286_s5 }
  0xf1   :  { %v1665_v55 = vpop.permute.xlu0 %385 }
  0xf2   :  { %2880 = vst [vmem:[#allocation21_spill] sm:$0xff] %v1665_v55  ;;  %v1667_v61 = vpop.permute.xlu1 %292 }
  0xf3   :  { %2881 = vst [vmem:[#allocation22_spill] sm:$0xff] %v1667_v61  ;;  %590 = vperm.xlu1 %1219, %v1366_v6  }
  0xf4   :  { %855 = vrot.lane.b32.xlu0 %v1625_v33, %s1288_s6 }
  0xf6   :  { %v1675_v11 = vpop.permute.xlu1 %299  ;;  %v1677_v16 = vpop.permute.xlu0 %401 }
  0xf7   :  { %2882 = vst [vmem:[#allocation23_spill] sm:$0xff] %v1675_v11  ;;  %2883 = vst [vmem:[#allocation24_spill] sm:$0xff] %v1677_v16  ;;  %597 = vrot.lane.b32.xlu1 %v1531_v60, %s1286_s5  ;;  %v1698_v16 = vrot.slane %v1686_v37, %v1358_v4  ;;  %v127_v11 = vsel %vm2838_vm8, %v1524_v59, %v1514_v56 }
  0xf8   :  { %867 = vrot.lane.b32.xlu0 %v1625_v33, %s1293_s7  ;;  %1220 = vset.pattern.permute.xlu1 %v1319_v36 }
  0xf9   :  { %2887 = vst [vmem:[#allocation28_spill] sm:$0xff] %v1698_v16 }
  0xfa   :  { %v1689_v55 = vpop.permute.xlu1 %308 }
  0xfb   :  { %2885 = vst [vmem:[#allocation26_spill] sm:$0xff] %v1689_v55  ;;  %v1691_v51 = vpop.permute.xlu0 %417  ;;  %606 = vperm.xlu1 %1220, %v1366_v6  }
  0xfc   :  { %2886 = vst [vmem:[#allocation27_spill] sm:$0xff] %v1691_v51  ;;  %879 = vrot.lane.b32.xlu0 %v1625_v33, %s1295_s8 }
  0xfe   :  { %v1707_v51 = vpop.permute.xlu1 %317 }
  0xff   :  { %2890 = vst [vmem:[#allocation29_spill] sm:$0xff] %v1707_v51  ;;  %615 = vrot.lane.b32.xlu1 %v1520_v57, %s1288_s6  ;;  %v126_v51 = vsel %vm2838_vm8, %v1514_v56, %v1524_v59  ;;  %vm201_vm8 = vcmp.lt.s32.totalorder %v1673_v5, 111 }
 0x100   :  { %v1711_v6 = vpop.permute.xlu0 %433  ;;  %904 = vrot.lane.b32.xlu0 %v1698_v16, %s1278_s0  ;;  %v129_v59 = vsel %vm1715_vm3, %v126_v51, 0.0 }
 0x101   :  { %2891 = vst [vmem:[#allocation30_spill] sm:$0xff] %v1711_v6  ;;  %v74_v6 = vsel %vm2840_vm2, %v1487_v43, %v1489_v44  ;;  %v93_v44 = vsel %vm2866_vm5, %v1494_v46, %v1496_v47 }
 0x102   :  { %v1741_v55 = vpop.permute.xlu1 %331  ;;  %v77_v61 = vsel %vm1715_vm3, %v74_v6, 0.0  ;;  %v109_v6 = vsel %vm2845_vm7, %v1501_v49, %v1508_v52  ;;  %v92_v49 = vsel %vm2866_vm5, %v1496_v47, %v1494_v46  ;;  %v94_v24 = vsel %vm2841_vm0, %v93_v44, 0.0 }
 0x103   :  { %2898 = vst [vmem:[#allocation31_spill] sm:$0xff] %v1741_v55  ;;  %629 = vrot.lane.b32.xlu1 %v1531_v60, %s1293_s7  ;;  %v84_v35 = vmul.f32 %v1482_v42, %v77_v61  ;;  %v111_v52 = vsel %vm1766_vm10, %v110_v30, 0.0  ;;  %v112_v61 = vsel %vm1758_vm9, %v109_v6, 0.0  ;;  %v100_v56 = vmul.f32 %v1505_v50, %v94_v24 }
 0x104   :  { %v1750_v43 = vpop.permute.xlu0 %450  ;;  %916 = vrot.lane.b32.xlu0 %v1698_v16, %s1281_s2  ;;  %v101_v46 = vmul.f32 %v1505_v50, %v92_v49  ;;  %v128_v47 = vsel %vm1702_vm1, %v127_v11, 0.0  ;;  %v85_v6 = vadd.f32 %v83_v22, %v1480_v40  ;;  %v117_v42 = vmul.f32 %v1512_v54, %v111_v52 }
 0x105   :  { %2899 = vst [vmem:[#allocation32_spill] sm:$0xff] %v1750_v43  ;;  %v1320_v43 = vmov 35   ;;  %v86_v30 = vadd.f32 %v84_v35, %v1480_v40  ;;  %v134_v11 = vmul.f32 %v1522_v58, %v128_v47  ;;  %v135_v49 = vmul.f32 %v1522_v58, %v129_v59 }
 0x106   :  { %1223 = vset.pattern.permute.xlu1 %v1320_v43  ;;  %1224 = vset.pattern.permute.xlu0 %v1320_v43  ;;  %v1778_v55 = vpop.permute.xlu1 %333  ;;  %v102_v22 = vadd.f32 %v100_v56, %v85_v6  ;;  %v1831_v24 = vrot.slane %v1549_v10, %v1356_v3  ;;  %v151_v56 = vsel %vm150_vm11, %v1542_v2, %v1533_v62 }
 0x107   :  { %631 = vrot.lane.b32.xlu1 %v1520_v57, %s1293_s7  ;;  %v103_v35 = vadd.f32 %v101_v46, %v86_v30  ;;  %v168_v46 = vsel %vm2839_vm13, %v1540_v1, %v1559_v14  ;;  %v152_v10 = vsel %vm150_vm11, %v1533_v62, %v1542_v2  ;;  %v142_v47 = vmul.f32 %v1535_v63, %v1370_v8 }
 0x108   :  { %v1802_v43 = vpop.permute.xlu0 %464  ;;  %928 = vrot.lane.b32.xlu0 %v1698_v16, %s1282_s30  ;;  %v143_v6 = vmul.f32 %v1535_v63, %v1373_v9  ;;  %v186_v30 = vsel %vm184_vm14, %v1575_v19, %v1567_v17  ;;  %v154_v8 = vsel %vm1758_vm9, %v152_v10, 0.0  ;;  %v232_v10 = vsel %vm2840_vm2, %v1605_v28, %v1599_v27 }
 0x109   :  { %2904 = vst [vmem:[#allocation33_spill] sm:$0xff] %v1802_v43  ;;  %v118_v43 = vmul.f32 %v1512_v54, %v112_v61  ;;  %v119_v61 = vadd.f32 %v117_v42, %v102_v22 }
 0x10a   :  { %v1812_v44 = vpop.permute.xlu1 %347 }
 0x10b   :  { %645 = vrot.lane.b32.xlu1 %v1531_v60, %s1295_s8  ;;  %v120_v54 = vadd.f32 %v118_v43, %v103_v35  ;;  %v169_v43 = vsel %vm2839_vm13, %v1559_v14, %v1540_v1  ;;  %v136_v62 = vadd.f32 %v134_v11, %v119_v61  ;;  %v153_v1 = vsel %vm1736_vm6, %v151_v56, 0.0  ;;  %vm1899_vm13 = vmand %vm52_vm12, %vm1758_vm9 }
 0x10c   :  { %v1823_v51 = vpop.permute.xlu0 %473  ;;  %940 = vrot.lane.b32.xlu0 %v1698_v16, %s1284_s4  ;;  %v170_v14 = vsel %vm1702_vm1, %v168_v46, 0.0  ;;  %v159_v22 = vmul.f32 %v1547_v7, %v153_v1  ;;  %v171_v9 = vsel %vm1852_vm15, %v169_v43, 0.0  ;;  %v202_v35 = vsel %vm201_vm8, %v1583_v21, %v1591_v25  ;;  %v1918_v43 = vld [vmem:[#allocation2 + $0xb] ss:$4 sm:$0x3] }
 0x10d   :  { %2905 = vst [vmem:[#allocation34_spill] sm:$0xff] %v1823_v51  ;;  %v137_v2 = vadd.f32 %v135_v49, %v120_v54  ;;  %v160_v11 = vmul.f32 %v1547_v7, %v154_v8  ;;  %v185_v49 = vsel %vm184_vm14, %v1567_v17, %v1575_v19  ;;  %v203_v56 = vsel %vm201_vm8, %v1591_v25, %v1583_v21 }
 0x10e   :  { %v1834_v52 = vpop.permute.xlu1 %349  ;;  %v144_v17 = vadd.f32 %v142_v47, %v136_v62  ;;  %v176_v19 = vmul.f32 %v1551_v12, %v170_v14  ;;  %v188_v46 = vsel %vm52_vm12, %v186_v30, 0.0  ;;  %v177_v25 = vmul.f32 %v1551_v12, %v171_v9 }
 0x10f   :  { %676 = vrot.lane.b32.xlu1 %v1831_v24, %s1278_s0  ;;  %v145_v21 = vadd.f32 %v143_v6, %v137_v2  ;;  %v204_v1 = vsel %vm1736_vm6, %v202_v35, 0.0  ;;  %v231_v62 = vsel %vm2840_vm2, %v1599_v27, %v1605_v28  ;;  %v193_v8 = vmul.f32 %v1561_v15, %v185_v49 }
 0x110   :  { %956 = vrot.lane.b32.xlu0 %v1698_v16, %s1286_s5  ;;  %v161_v30 = vadd.f32 %v159_v22, %v144_v17  ;;  %v205_v2 = vsel %vm1899_vm13, %v203_v56, 0.0  ;;  %v248_v6 = vsel %vm2866_vm5, %v1627_v34, %v1615_v31  ;;  %v194_v35 = vmul.f32 %v1561_v15, %v188_v46 }
 0x111   :  { %v1867_v59 = vpop.permute.xlu0 %489  ;;  %v162_v9 = vadd.f32 %v160_v11, %v145_v21  ;;  %v233_v27 = vsel %vm1723_vm4, %v232_v10, 0.0  ;;  %v1947_v28 = vrot.slane %v1918_v43, %v1358_v4  ;;  %v210_v49 = vmul.f32 %v1569_v18, %v204_v1 }
 0x112   :  { %2908 = vst [vmem:[#allocation35_spill] sm:$0xff] %v1867_v59  ;;  %v1879_v54 = vpop.permute.xlu1 %376  ;;  %v178_v22 = vadd.f32 %v176_v19, %v161_v30  ;;  %v234_v11 = vsel %vm1715_vm3, %v231_v62, 0.0  ;;  %v264_v56 = vsel %vm2845_vm7, %v1643_v41, %v1635_v38  ;;  %v211_v46 = vmul.f32 %v1569_v18, %v205_v2 }
 0x113   :  { %688 = vrot.lane.b32.xlu1 %v1831_v24, %s1281_s2  ;;  %2911 = vst [vmem:[#allocation36_spill] sm:$0xff] %v1947_v28  ;;  %v179_v17 = vadd.f32 %v177_v25, %v162_v9  ;;  %v249_v10 = vsel %vm2841_vm0, %v248_v6, 0.0  ;;  %v263_v4 = vsel %vm2845_vm7, %v1635_v38, %v1643_v41  ;;  %v239_v1 = vmul.f32 %v1577_v20, %v233_v27 }
 0x114   :  { %968 = vrot.lane.b32.xlu0 %v1698_v16, %s1288_s6  ;;  %v195_v21 = vadd.f32 %v193_v8, %v178_v22  ;;  %v247_v25 = vsel %vm2866_vm5, %v1615_v31, %v1627_v34  ;;  %vm2912_vm2 = vcmp.lt.s32.totalorder %v1673_v5, 1  ;;  %v240_v38 = vmul.f32 %v1577_v20, %v234_v11 }
 0x115   :  { %v280_v62 = vsel %vm2912_vm2, %v1659_v53, %v1651_v48  ;;  %v196_v2 = vadd.f32 %v194_v35, %v179_v17  ;;  %v265_v41 = vsel %vm1766_vm10, %v264_v56, 0.0  ;;  %vm2913_vm0 = vmmov %vm2912_vm2  ;;  %v255_v34 = vmul.f32 %v1589_v23, %v249_v10 }
 0x116   :  { %v1927_v47 = vpop.permute.xlu1 %378  ;;  %v1929_v14 = vpop.permute.xlu0 %505  ;;  %v279_v8 = vsel %vm2913_vm0, %v1651_v48, %v1659_v53  ;;  %v212_v31 = vadd.f32 %v210_v49, %v195_v21  ;;  %v266_v6 = vsel %vm1758_vm9, %v263_v4, 0.0  ;;  %v256_v35 = vmul.f32 %v1589_v23, %v247_v25 }
 0x117   :  { %700 = vrot.lane.b32.xlu1 %v1831_v24, %s1282_s30  ;;  %v213_v9 = vadd.f32 %v211_v46, %v196_v2  ;;  %v281_v27 = vsel %vm1702_vm1, %v280_v62, 0.0  ;;  %v271_v53 = vmul.f32 %v1597_v26, %v265_v41  ;;  %v282_v11 = vsel %vm1715_vm3, %v279_v8, 0.0  ;;  %v2915_v2 = vld [vmem:[#allocation23_spill] sm:$0xff]  ;;  %v2916_v41 = vld [vmem:[#allocation29_spill] sm:$0xff] }
 0x118   :  { %980 = vrot.lane.b32.xlu0 %v1698_v16, %s1293_s7  ;;  %v241_v48 = vadd.f32 %v239_v1, %v212_v31  ;;  %v272_v56 = vmul.f32 %v1597_v26, %v266_v6  ;;  %v287_v10 = vmul.f32 %v1607_v29, %v281_v27  ;;  %v288_v21 = vmul.f32 %v1607_v29, %v282_v11  ;;  %v2917_v8 = vld [vmem:[#allocation17_spill] sm:$0xff]  ;;  %v2919_v6 = vld [vmem:[#allocation8_spill] sm:$0xff] }
 0x119   :  { %v242_v49 = vadd.f32 %v240_v38, %v213_v9  ;;  %v303_v38 = vsel %vm150_vm11, %v2915_v2, %v1617_v32  ;;  %vm2918_vm0 = vcmp.lt.s32.totalorder %v1673_v5, 113  ;;  %v2920_v9 = vld [vmem:[#allocation22_spill] sm:$0xff]  ;;  %v304_v27 = vsel %vm150_vm11, %v1617_v32, %v2915_v2 }
 0x11a   :  { %v1963_v19 = vpop.permute.xlu1 %392  ;;  %v257_v46 = vadd.f32 %v255_v34, %v241_v48  ;;  %v319_v31 = vsel %vm2918_vm0, %v2917_v8, %v2916_v41  ;;  %vm2921_vm2 = vmmov %vm2918_vm0  ;;  %v306_v2 = vsel %vm1758_vm9, %v304_v27, 0.0  ;;  %vm2927_vm0 = vcmp.lt.s32.totalorder %v1673_v5, 17 }
 0x11b   :  { %v1974_v30 = vpop.permute.xlu0 %534  ;;  %712 = vrot.lane.b32.xlu1 %v1831_v24, %s1284_s4  ;;  %v258_v4 = vadd.f32 %v256_v35, %v242_v49  ;;  %v295_v35 = vmul.f32 %v2920_v9, %v2919_v6  ;;  %v320_v48 = vsel %vm2921_vm2, %v2916_v41, %v2917_v8  ;;  %v2925_v41 = vld [vmem:[#allocation26_spill] sm:$0xff]  ;;  %vm2928_vm2 = vmmov %vm2927_vm0 }
 0x11c   :  { %992 = vrot.lane.b32.xlu0 %v1698_v16, %s1295_s8  ;;  %v273_v25 = vadd.f32 %v271_v53, %v257_v46  ;;  %v312_v8 = vmul.f32 %v2925_v41, %v306_v2  ;;  %v2926_v6 = vld [vmem:[#allocation18_spill] sm:$0xff] }
 0x11d   :  { %v274_v62 = vadd.f32 %v272_v56, %v258_v4  ;;  %v2923_v56 = vld [vmem:[#allocation9_spill] sm:$0xff]  ;;  %v321_v4 = vsel %vm1702_vm1, %v319_v31, 0.0  ;;  %v351_v31 = vsel %vm201_vm8, %v1812_v44, %v1834_v52 }
 0x11e   :  { %v1993_v22 = vpop.permute.xlu1 %394  ;;  %v289_v34 = vadd.f32 %v287_v10, %v273_v25  ;;  %v296_v46 = vmul.f32 %v2920_v9, %v2923_v56  ;;  %v305_v10 = vsel %vm1736_vm6, %v303_v38, 0.0  ;;  %v2924_v25 = vld [vmem:[#allocation31_spill] sm:$0xff]  ;;  %v327_v27 = vmul.f32 %v2926_v6, %v321_v4 }
 0x11f   :  { %728 = vrot.lane.b32.xlu1 %v1831_v24, %s1286_s5  ;;  %v290_v11 = vadd.f32 %v288_v21, %v274_v62  ;;  %v336_v32 = vsel %vm184_vm14, %v1778_v55, %v2924_v25  ;;  %v311_v21 = vmul.f32 %v2925_v41, %v305_v10  ;;  %v322_v62 = vsel %vm1852_vm15, %v320_v48, 0.0 }
 0x120   :  { %v2001_v17 = vpop.permute.xlu0 %550  ;;  %1017 = vrot.lane.b32.xlu0 %v1947_v28, %s1278_s0  ;;  %v297_v38 = vadd.f32 %v295_v35, %v289_v34  ;;  %v335_v48 = vsel %vm184_vm14, %v2924_v25, %v1778_v55  ;;  %v338_v56 = vsel %vm52_vm12, %v336_v32, 0.0  ;;  %v352_v34 = vsel %vm201_vm8, %v1834_v52, %v1812_v44 }
 0x121   :  { %2914 = vst [vmem:[#allocation37_spill] sm:$0xff] %v2001_v17  ;;  %v298_v2 = vadd.f32 %v296_v46, %v290_v11  ;;  %v328_v16 = vmul.f32 %v2926_v6, %v322_v62  ;;  %v353_v41 = vsel %vm1736_vm6, %v351_v31, 0.0  ;;  %v380_v55 = vsel %vm2927_vm0, %v1879_v54, %v1927_v47  ;;  %v2929_v11 = vld [vmem:[#allocation19_spill] sm:$0xff] }
 0x122   :  { %v409_v1 = vpop.permute.xlu1 %408  ;;  %v313_v4 = vadd.f32 %v311_v21, %v297_v38  ;;  %v381_v44 = vsel %vm2928_vm2, %v1927_v47, %v1879_v54  ;;  %v343_v46 = vmul.f32 %v2929_v11, %v335_v48  ;;  %v344_v25 = vmul.f32 %v2929_v11, %v338_v56  ;;  %v2930_v21 = vld [vmem:[#allocation15_spill] sm:$0xff]  ;;  %v2932_v56 = vld [vmem:[#allocation20_spill] sm:$0xff] }
 0x123   :  { %740 = vrot.lane.b32.xlu1 %v1831_v24, %s1288_s6  ;;  %v314_v52 = vadd.f32 %v312_v8, %v298_v2  ;;  %v354_v32 = vsel %vm1899_vm13, %v352_v34, 0.0  ;;  %v2089_v62 = vrot.slane %v2930_v21, %v1356_v3  ;;  %v397_v54 = vsel %vm2866_vm5, %v1993_v22, %v1963_v19 }
 0x124   :  { %1029 = vrot.lane.b32.xlu0 %v1947_v28, %s1281_s2  ;;  %v329_v38 = vadd.f32 %v327_v27, %v313_v4  ;;  %v2099_v8 = vrot.slane %v1918_v43, %v1356_v3  ;;  %v359_v34 = vmul.f32 %v2932_v56, %v353_v41  ;;  %v382_v2 = vsel %vm1723_vm4, %v381_v44, 0.0  ;;  %v2934_v44 = vld [vmem:[#allocation21_spill] sm:$0xff] }
 0x125   :  { %v2029_v53 = vpop.permute.xlu0 %566  ;;  %v330_v48 = vadd.f32 %v328_v16, %v314_v52  ;;  %v383_v27 = vsel %vm1715_vm3, %v380_v55, 0.0  ;;  %v360_v4 = vmul.f32 %v2932_v56, %v354_v32  ;;  %v396_v41 = vsel %vm2866_vm5, %v1963_v19, %v1993_v22 }
 0x126   :  { %2922 = vst [vmem:[#allocation23_spill] sm:$0xff] %v2029_v53  ;;  %v411_v49 = vpop.permute.xlu1 %410  ;;  %2931 = vst [vmem:[#allocation29_spill] sm:$0xff] %v2099_v8  ;;  %v345_v16 = vadd.f32 %v343_v46, %v329_v38  ;;  %vm2933_vm0 = vcmp.ge.s32.totalorder %v1673_v5, 16  ;;  %v388_v52 = vmul.f32 %v2934_v44, %v382_v2  ;;  %vm2935_vm2 = vcmp.lt.s32.totalorder %v1673_v5, 1 }
 0x127   :  { %752 = vrot.lane.b32.xlu1 %v1831_v24, %s1293_s7  ;;  %v412_v21 = vsel %vm2845_vm7, %v409_v1, %v411_v49  ;;  %v413_v11 = vsel %vm2845_vm7, %v411_v49, %v409_v1  ;;  %v346_v43 = vadd.f32 %v344_v25, %v330_v48  ;;  %v398_v55 = vsel %vm2933_vm0, %v397_v54, 0.0  ;;  %vm2936_vm7 = vmmov %vm2935_vm2  ;;  %v2937_v48 = vld [vmem:[#allocation24_spill] sm:$0xff] }
 0x128   :  { %1041 = vrot.lane.b32.xlu0 %v1947_v28, %s1282_s30  ;;  %v389_v1 = vmul.f32 %v2934_v44, %v383_v27  ;;  %v414_v25 = vsel %vm1766_vm10, %v413_v11, 0.0  ;;  %v415_v19 = vsel %vm1758_vm9, %v412_v21, 0.0  ;;  %v361_v38 = vadd.f32 %v359_v34, %v345_v16  ;;  %v2938_v34 = vld [vmem:[#allocation27_spill] sm:$0xff]  ;;  %v2940_v44 = vld [vmem:[#allocation30_spill] sm:$0xff] }
 0x129   :  { %v362_v54 = vadd.f32 %v360_v4, %v346_v43  ;;  %v404_v2 = vmul.f32 %v2937_v48, %v398_v55  ;;  %v405_v27 = vmul.f32 %v2937_v48, %v396_v41  ;;  %v420_v4 = vmul.f32 %v2938_v34, %v414_v25 }
 0x12a   :  { %v425_v35 = vpop.permute.xlu1 %424  ;;  %v2066_v10 = vpop.permute.xlu0 %582  ;;  %v421_v16 = vmul.f32 %v2938_v34, %v415_v19 }
 0x12b   :  { %764 = vrot.lane.b32.xlu1 %v1831_v24, %s1295_s8  ;;  %v391_v21 = vadd.f32 %v389_v1, %v362_v54 }
 0x12c   :  { %1053 = vrot.lane.b32.xlu0 %v1947_v28, %s1284_s4 }
 0x12d   :  { %v407_v48 = vadd.f32 %v405_v27, %v391_v21  ;;  %v2942_v27 = vld [vmem:[#allocation11_spill] sm:$0xff] }
 0x12e   :  { %v427_v47 = vpop.permute.xlu1 %426  ;;  %v2095_v31 = vpop.permute.xlu0 %599 }
 0x12f   :  { %789 = vrot.lane.b32.xlu1 %v2089_v62, %s1278_s0  ;;  %v428_v49 = vsel %vm2935_vm2, %v425_v35, %v427_v47  ;;  %v429_v32 = vsel %vm2936_vm7, %v427_v47, %v425_v35  ;;  %v390_v47 = vadd.f32 %v388_v52, %v361_v38  ;;  %v423_v1 = vadd.f32 %v421_v16, %v407_v48 }
 0x130   :  { %1069 = vrot.lane.b32.xlu0 %v1947_v28, %s1286_s5  ;;  %v430_v35 = vsel %vm1702_vm1, %v429_v32, 0.0  ;;  %v431_v11 = vsel %vm1715_vm3, %v428_v49, 0.0  ;;  %v2941_v49 = vld [vmem:[#allocation32_spill] sm:$0xff]  ;;  %vm2946_vm7 = vcmp.lt.s32.totalorder %v1673_v5, 113  ;;  %vm2949_vm2 = vcmp.lt.s32.totalorder %v1673_v5, 17 }
 0x131   :  { %v406_v55 = vadd.f32 %v404_v2, %v390_v47  ;;  %v436_v56 = vmul.f32 %v2940_v44, %v430_v35  ;;  %v437_v32 = vmul.f32 %v2940_v44, %v431_v11  ;;  %v2943_v11 = vld [vmem:[#allocation10_spill] sm:$0xff]  ;;  %vm2947_vm0 = vmmov %vm2946_vm7 }
 0x132   :  { %v2127_v46 = vpop.permute.xlu0 %613  ;;  %v2133_v22 = vpop.permute.xlu1 %441 }
 0x133   :  { %801 = vrot.lane.b32.xlu1 %v2089_v62, %s1281_s2  ;;  %v422_v52 = vadd.f32 %v420_v4, %v406_v55  ;;  %v439_v2 = vadd.f32 %v437_v32, %v423_v1  ;;  %v444_v35 = vmul.f32 %v2133_v22, %v2942_v27  ;;  %v445_v47 = vmul.f32 %v2133_v22, %v2943_v11 }
 0x134   :  { %1079 = vrot.lane.b32.xlu0 %v2099_v8, %s1288_s6 }
 0x135   :  { %v438_v54 = vadd.f32 %v436_v56, %v422_v52  ;;  %v447_v32 = vadd.f32 %v445_v47, %v439_v2  ;;  %v2945_v52 = vld [vmem:[#allocation33_spill] sm:$0xff] }
 0x136   :  { %v449_v43 = vpop.permute.xlu1 %448  ;;  %v2147_v41 = vpop.permute.xlu0 %622 }
 0x137   :  { %2939 = vst [vmem:[#allocation17_spill] sm:$0xff] %v2147_v41  ;;  %813 = vrot.lane.b32.xlu1 %v2089_v62, %s1282_s30  ;;  %v452_v25 = vsel %vm150_vm11, %v449_v43, %v2941_v49  ;;  %v453_v19 = vsel %vm150_vm11, %v2941_v49, %v449_v43  ;;  %v446_v55 = vadd.f32 %v444_v35, %v438_v54 }
 0x138   :  { %1091 = vrot.lane.b32.xlu0 %v2099_v8, %s1293_s7  ;;  %v454_v48 = vsel %vm1736_vm6, %v452_v25, 0.0  ;;  %v455_v21 = vsel %vm1758_vm9, %v453_v19, 0.0 }
 0x13a   :  { %v2161_v38 = vpop.permute.xlu1 %457 }
 0x13b   :  { %825 = vrot.lane.b32.xlu1 %v2089_v62, %s1284_s4  ;;  %v2173_v4 = vpop.permute.xlu0 %638  ;;  %v460_v56 = vmul.f32 %v2161_v38, %v454_v48  ;;  %v461_v16 = vmul.f32 %v2161_v38, %v455_v21 }
 0x13c   :  { %2944 = vst [vmem:[#allocation8_spill] sm:$0xff] %v2173_v4  ;;  %647 = vrot.lane.b32.xlu0 %v1520_v57, %s1295_s8 }
 0x13d   :  { %v462_v54 = vadd.f32 %v460_v56, %v446_v55  ;;  %v463_v2 = vadd.f32 %v461_v16, %v447_v32 }
 0x13e   :  { %v467_v43 = vpop.permute.xlu1 %466 }
 0x13f   :  { %v468_v1 = vsel %vm2946_vm7, %v2945_v52, %v467_v43  ;;  %v469_v49 = vsel %vm2947_vm0, %v467_v43, %v2945_v52  ;;  %841 = vrot.lane.b32.xlu1 %v2089_v62, %s1286_s5  ;;  %v2195_v11 = vpop.permute.xlu0 %678  ;;  %vm2950_vm7 = vmmov %vm2949_vm2  ;;  %vm2951_vm0 = vcmp.ge.s32.totalorder %v1673_v5, 16 }
 0x140   :  { %v470_v25 = vsel %vm1702_vm1, %v468_v1, 0.0  ;;  %v471_v19 = vsel %vm1852_vm15, %v469_v49, 0.0  ;;  %1105 = vrot.lane.b32.xlu0 %v1947_v28, %s1295_s8  ;;  %v2948_v1 = vld [vmem:[#allocation25_spill] sm:$0xff] }
 0x141   :  { %v476_v27 = vmul.f32 %v1823_v51, %v470_v25  ;;  %v477_v35 = vmul.f32 %v1823_v51, %v471_v19  ;;  %v2213_v49 = vrot.slane %v2948_v1, %v1356_v3 }
 0x142   :  { %v481_v47 = vpop.permute.xlu1 %480 }
 0x143   :  { %v478_v48 = vadd.f32 %v476_v27, %v462_v54  ;;  %v479_v21 = vadd.f32 %v477_v35, %v463_v2  ;;  %853 = vrot.lane.b32.xlu1 %v2089_v62, %s1288_s6  ;;  %v2203_v56 = vpop.permute.xlu0 %690 }
 0x146   :  { %v483_v43 = vpop.permute.xlu1 %482 }
 0x147   :  { %v485_v52 = vsel %vm184_vm14, %v483_v43, %v481_v47  ;;  %865 = vrot.lane.b32.xlu1 %v2089_v62, %s1293_s7  ;;  %v484_v16 = vsel %vm184_vm14, %v481_v47, %v483_v43  ;;  %v2217_v54 = vpop.permute.xlu0 %702 }
 0x148   :  { %v487_v55 = vsel %vm52_vm12, %v485_v52, 0.0  ;;  %v492_v25 = vmul.f32 %v1867_v59, %v484_v16 }
 0x149   :  { %v493_v19 = vmul.f32 %v1867_v59, %v487_v55 }
 0x14a   :  { %v497_v32 = vpop.permute.xlu1 %496  ;;  %v494_v43 = vadd.f32 %v492_v25, %v478_v48 }
 0x14b   :  { %877 = vrot.lane.b32.xlu1 %v2089_v62, %s1295_s8  ;;  %v495_v52 = vadd.f32 %v493_v19, %v479_v21 }
 0x14e   :  { %v499_v2 = vpop.permute.xlu1 %498 }
 0x14f   :  { %v500_v27 = vsel %vm201_vm8, %v497_v32, %v499_v2  ;;  %v501_v35 = vsel %vm201_vm8, %v499_v2, %v497_v32  ;;  %902 = vrot.lane.b32.xlu1 %v2213_v49, %s1278_s0  ;;  %v2233_v32 = vpop.permute.xlu0 %714 }
 0x150   :  { %v502_v3 = vsel %vm1736_vm6, %v500_v27, 0.0  ;;  %v503_v47 = vsel %vm1899_vm13, %v501_v35, 0.0 }
 0x151   :  { %v508_v16 = vmul.f32 %v1929_v14, %v502_v3  ;;  %v509_v55 = vmul.f32 %v1929_v14, %v503_v47 }
 0x152   :  { %v526_v1 = vpop.permute.xlu1 %525 }
 0x153   :  { %v510_v59 = vadd.f32 %v508_v16, %v494_v43  ;;  %v511_v51 = vadd.f32 %v509_v55, %v495_v52  ;;  %914 = vrot.lane.b32.xlu1 %v2213_v49, %s1281_s2  ;;  %v2247_v3 = vpop.permute.xlu0 %730 }
 0x156   :  { %v528_v2 = vpop.permute.xlu1 %527 }
 0x157   :  { %v529_v27 = vsel %vm2949_vm2, %v526_v1, %v528_v2  ;;  %v530_v48 = vsel %vm2950_vm7, %v528_v2, %v526_v1  ;;  %926 = vrot.lane.b32.xlu1 %v2213_v49, %s1282_s30  ;;  %v2257_v2 = vpop.permute.xlu0 %742  ;;  %vm2952_vm2 = vcmp.lt.s32.totalorder %v1673_v5, 15 }
 0x158   :  { %v531_v21 = vsel %vm1723_vm4, %v530_v48, 0.0  ;;  %v532_v25 = vsel %vm1715_vm3, %v529_v27, 0.0  ;;  %vm2953_vm7 = vmmov %vm2952_vm2 }
 0x159   :  { %v537_v19 = vmul.f32 %v1974_v30, %v531_v21  ;;  %v538_v35 = vmul.f32 %v1974_v30, %v532_v25 }
 0x15a   :  { %v542_v47 = vpop.permute.xlu1 %541 }
 0x15b   :  { %v539_v43 = vadd.f32 %v537_v19, %v510_v59  ;;  %v540_v52 = vadd.f32 %v538_v35, %v511_v51  ;;  %938 = vrot.lane.b32.xlu1 %v2213_v49, %s1284_s4  ;;  %v2265_v19 = vpop.permute.xlu0 %754 }
 0x15e   :  { %v544_v16 = vpop.permute.xlu1 %543 }
 0x15f   :  { %v545_v55 = vsel %vm2866_vm5, %v542_v47, %v544_v16  ;;  %v546_v1 = vsel %vm2866_vm5, %v544_v16, %v542_v47  ;;  %954 = vrot.lane.b32.xlu1 %v2213_v49, %s1286_s5 }
 0x160   :  { %v547_v27 = vsel %vm2951_vm0, %v546_v1, 0.0  ;;  %v554_v51 = vmul.f32 %v2001_v17, %v545_v55  ;;  %vm2954_vm0 = vcmp.lt.s32.totalorder %v1673_v5, 1 }
 0x161   :  { %v553_v59 = vmul.f32 %v2001_v17, %v547_v27 }
 0x162   :  { %v556_v48 = vadd.f32 %v554_v51, %v540_v52  ;;  %v558_v21 = vpop.permute.xlu1 %557 }
 0x163   :  { %v555_v25 = vadd.f32 %v553_v59, %v539_v43  ;;  %966 = vrot.lane.b32.xlu1 %v2213_v49, %s1288_s6 }
 0x166   :  { %v560_v35 = vpop.permute.xlu1 %559 }
 0x167   :  { %v561_v47 = vsel %vm2952_vm2, %v558_v21, %v560_v35  ;;  %v562_v16 = vsel %vm2953_vm7, %v560_v35, %v558_v21  ;;  %978 = vrot.lane.b32.xlu1 %v2213_v49, %s1293_s7  ;;  %v2281_v21 = vpop.permute.xlu0 %766  ;;  %vm2955_vm2 = vmmov %vm2954_vm0  ;;  %vm2957_vm7 = vcmp.lt.s32.totalorder %v1673_v5, 113 }
 0x168   :  { %v563_v52 = vsel %vm1766_vm10, %v562_v16, 0.0  ;;  %v564_v43 = vsel %vm1758_vm9, %v561_v47, 0.0 }
 0x169   :  { %v569_v55 = vmul.f32 %v2029_v53, %v563_v52  ;;  %v570_v1 = vmul.f32 %v2029_v53, %v564_v43 }
 0x16a   :  { %v574_v27 = vpop.permute.xlu1 %573 }
 0x16b   :  { %v571_v51 = vadd.f32 %v569_v55, %v555_v25  ;;  %v572_v59 = vadd.f32 %v570_v1, %v556_v48  ;;  %990 = vrot.lane.b32.xlu1 %v2213_v49, %s1295_s8  ;;  %v2295_v43 = vpop.permute.xlu0 %791 }
 0x16e   :  { %v576_v35 = vpop.permute.xlu1 %575 }
 0x16f   :  { %v577_v17 = vsel %vm2954_vm0, %v574_v27, %v576_v35  ;;  %v578_v16 = vsel %vm2955_vm2, %v576_v35, %v574_v27  ;;  %1015 = vrot.lane.b32.xlu1 %v2099_v8, %s1278_s0  ;;  %vm2958_vm0 = vmmov %vm2957_vm7  ;;  %vm2962_vm2 = vcmp.lt.s32.totalorder %v1673_v5, 17 }
 0x170   :  { %v579_v47 = vsel %vm1702_vm1, %v578_v16, 0.0  ;;  %v580_v48 = vsel %vm1715_vm3, %v577_v17, 0.0 }
 0x171   :  { %v585_v25 = vmul.f32 %v2066_v10, %v579_v47  ;;  %v586_v52 = vmul.f32 %v2066_v10, %v580_v48 }
 0x172   :  { %v2297_v55 = vpop.permute.xlu1 %590 }
 0x173   :  { %v587_v1 = vadd.f32 %v585_v25, %v571_v51  ;;  %v588_v53 = vadd.f32 %v586_v52, %v572_v59  ;;  %v593_v27 = vmul.f32 %v2297_v55, %v1531_v60  ;;  %v594_v35 = vmul.f32 %v2297_v55, %v1520_v57  ;;  %1027 = vrot.lane.b32.xlu1 %v2099_v8, %s1281_s2  ;;  %v2313_v60 = vpop.permute.xlu0 %803 }
 0x175   :  { %v595_v17 = vadd.f32 %v593_v27, %v587_v1  ;;  %v596_v16 = vadd.f32 %v594_v35, %v588_v53 }
 0x176   :  { %v598_v47 = vpop.permute.xlu1 %597 }
 0x177   :  { %v601_v48 = vsel %vm150_vm11, %v598_v47, %v2095_v31  ;;  %v602_v51 = vsel %vm150_vm11, %v2095_v31, %v598_v47  ;;  %1039 = vrot.lane.b32.xlu1 %v2099_v8, %s1282_s30  ;;  %v2325_v27 = vpop.permute.xlu0 %815 }
 0x178   :  { %v603_v57 = vsel %vm1736_vm6, %v601_v48, 0.0  ;;  %v604_v53 = vsel %vm1758_vm9, %v602_v51, 0.0 }
 0x17a   :  { %v2319_v59 = vpop.permute.xlu1 %606 }
 0x17b   :  { %2956 = vst [vmem:[#allocation22_spill] sm:$0xff] %v2319_v59  ;;  %v609_v25 = vmul.f32 %v2319_v59, %v603_v57  ;;  %v610_v52 = vmul.f32 %v2319_v59, %v604_v53  ;;  %1051 = vrot.lane.b32.xlu1 %v2099_v8, %s1284_s4 }
 0x17d   :  { %v611_v31 = vadd.f32 %v609_v25, %v595_v17  ;;  %v612_v1 = vadd.f32 %v610_v52, %v596_v16 }
 0x17e   :  { %v616_v35 = vpop.permute.xlu1 %615 }
 0x17f   :  { %v617_v47 = vsel %vm2957_vm7, %v2127_v46, %v616_v35  ;;  %v618_v48 = vsel %vm2958_vm0, %v616_v35, %v2127_v46  ;;  %1067 = vrot.lane.b32.xlu1 %v2099_v8, %s1286_s5  ;;  %v1225_v46 = vld [vmem:[%s2808_s1] sm:$0xff]  ;;  %v2344_v35 = vpop.permute.xlu0 %827  ;;  %vm2963_vm7 = vmmov %vm2962_vm2  ;;  %vm2965_vm0 = vcmp.ge.s32.totalorder %v1673_v5, 16  ;;  %s1321_s1 = smov [#allocation5]  }
 0x180   :  { %v619_v51 = vsel %vm1702_vm1, %v617_v47, 0.0  ;;  %v620_v17 = vsel %vm1852_vm15, %v618_v48, 0.0  ;;  %s1123_s11 = sshll.u32 %s1321_s1, 4  ;;  %s1124_s11 = int_to_ptr.vmem [resolvable:$true] %s1123_s11 }
 0x181   :  { %v625_v16 = vmul.f32 %v2147_v41, %v619_v51  ;;  %v626_v57 = vmul.f32 %v2147_v41, %v620_v17  ;;  %s1248_s12 = scalar_lea.vmem %s1124_s11, 512  ;;  %p1253_p9 = scmp.lt.s32.totalorder %s1124_s11, %s1124_s11 }
 0x182   :  { %v630_v53 = vpop.permute.xlu1 %629  ;;  %p1249_p8 = scmp.ne.s32.totalorder %s1124_s11, %s1248_s12  ;;  %p1254_p10 = scmp.lt.s32.totalorder %s1248_s12, %s1248_s12 }
 0x183   :  { %v627_v25 = vadd.f32 %v625_v16, %v611_v31  ;;  %v628_v52 = vadd.f32 %v626_v57, %v612_v1  ;;  %654 = vperm.xlu1 %1223, %v1225_v46   ;;  %v2356_v17 = vpop.permute.xlu0 %843 }
 0x184   :  { %p1255_p11 = por %p1254_p10, %p1253_p9 }
 0x186   :  { %v632_v59 = vpop.permute.xlu1 %631  ;;  %p1256_p12 = pnand %p1255_p11, %p1249_p8 }
 0x187   :  { %v633_v47 = vsel %vm184_vm14, %v630_v53, %v632_v59  ;;  %v634_v48 = vsel %vm184_vm14, %v632_v59, %v630_v53  ;;  %1081 = vrot.lane.b32.xlu1 %v1947_v28, %s1288_s6 }
 0x188   :  { %v636_v31 = vsel %vm52_vm12, %v634_v48, 0.0  ;;  %v641_v1 = vmul.f32 %v2173_v4, %v633_v47 }
 0x189   :  { %v642_v51 = vmul.f32 %v2173_v4, %v636_v31  ;;  %v2964_v31 = vld [vmem:[#allocation12_spill] sm:$0xff] }
 0x18a   :  { %v2358_v16 = vadd.f32 %v641_v1, %v627_v25  ;;  %v2360_v57 = vpop.permute.xlu1 %645  ;;  %v2374_v25 = vpop.permute.xlu0 %855 }
 0x18b   :  { %2960 = vst [vmem:[#allocation31_spill] sm:$0xff] %v2360_v57  ;;  %v2362_v46 = vadd.f32 %v642_v51, %v628_v52  ;;  %1093 = vrot.lane.b32.xlu1 %v1947_v28, %s1293_s7 }
 0x18c   :  { %2959 = vst [vmem:[#allocation9_spill] sm:$0xff] %v2358_v16 }
 0x18d   :  { %2961 = vst [vmem:[#allocation18_spill] sm:$0xff] %v2362_v46 }
 0x18e   :  { %v677_v59 = vpop.permute.xlu1 %676  ;;  %v2393_v46 = vpop.permute.xlu0 %867 }
 0x18f   :  { %v680_v53 = vsel %vm2962_vm2, %v677_v59, %v2195_v11  ;;  %v681_v47 = vsel %vm2963_vm7, %v2195_v11, %v677_v59  ;;  %1103 = vrot.lane.b32.xlu1 %v2099_v8, %s1295_s8  ;;  %vm2966_vm2 = vcmp.lt.s32.totalorder %v1673_v5, 15 }
 0x190   :  { %v682_v52 = vsel %vm1723_vm4, %v681_v47, 0.0  ;;  %v683_v48 = vsel %vm1715_vm3, %v680_v53, 0.0  ;;  %vm2967_vm7 = vmmov %vm2966_vm2 }
 0x191   :  { %v685_v1 = vmul.f32 %v683_v48, %v2964_v31  ;;  %v684_v4 = vmul.f32 %v682_v52, %v2964_v31 }
 0x192   :  { %v689_v51 = vpop.permute.xlu1 %688 }
 0x193   :  { %v692_v11 = vsel %vm2866_vm5, %v689_v51, %v2203_v56  ;;  %v693_v59 = vsel %vm2866_vm5, %v2203_v56, %v689_v51  ;;  %v687_v47 = vadd.f32 %v685_v1, %v1480_v40  ;;  %v686_v31 = vadd.f32 %v684_v4, %v1480_v40 }
 0x194   :  { %v694_v41 = vsel %vm2965_vm0, %v693_v59, 0.0  ;;  %v697_v48 = vmul.f32 %v692_v11, %v1505_v50  ;;  %v2968_v11 = vld [vmem:[#allocation13_spill] sm:$0xff]  ;;  %vm2969_vm0 = vcmp.lt.s32.totalorder %v1673_v5, 1 }
 0x195   :  { %v696_v53 = vmul.f32 %v694_v41, %v1505_v50 }
 0x196   :  { %v701_v52 = vpop.permute.xlu1 %700  ;;  %v699_v51 = vadd.f32 %v697_v48, %v687_v47  ;;  %v2970_v47 = vld [vmem:[#allocation14_spill] sm:$0xff] }
 0x197   :  { %v704_v16 = vsel %vm2966_vm2, %v701_v52, %v2217_v54  ;;  %v705_v56 = vsel %vm2967_vm7, %v2217_v54, %v701_v52  ;;  %v698_v50 = vadd.f32 %v696_v53, %v686_v31  ;;  %v2411_v54 = vpop.permute.xlu0 %879  ;;  %v725_v48 = vmul.f32 %v2970_v47, %v1535_v63  ;;  %vm2971_vm2 = vmmov %vm2969_vm0 }
 0x198   :  { %v706_v1 = vsel %vm1766_vm10, %v705_v56, 0.0  ;;  %v707_v41 = vsel %vm1758_vm9, %v704_v16, 0.0  ;;  %vm2972_vm7 = vcmp.lt.s32.totalorder %v1673_v5, 113 }
 0x199   :  { %v708_v59 = vmul.f32 %v706_v1, %v2968_v11  ;;  %v709_v40 = vmul.f32 %v707_v41, %v2968_v11 }
 0x19a   :  { %v713_v4 = vpop.permute.xlu1 %712 }
 0x19b   :  { %v710_v57 = vadd.f32 %v708_v59, %v698_v50  ;;  %v711_v28 = vadd.f32 %v709_v40, %v699_v51  ;;  %v716_v8 = vsel %vm2969_vm0, %v713_v4, %v2233_v32  ;;  %v2418_v1 = vpop.permute.xlu0 %904  ;;  %v717_v41 = vsel %vm2971_vm2, %v2233_v32, %v713_v4  ;;  %vm2973_vm0 = vmmov %vm2972_vm7 }
 0x19c   :  { %v719_v52 = vsel %vm1715_vm3, %v716_v8, 0.0  ;;  %v718_v51 = vsel %vm1702_vm1, %v717_v41, 0.0  ;;  %vm2974_vm2 = vcmp.lt.s32.totalorder %v1673_v5, 17 }
 0x19d   :  { %v721_v16 = vmul.f32 %v719_v52, %v1522_v58  ;;  %v720_v40 = vmul.f32 %v718_v51, %v1522_v58 }
 0x19e   :  { %v729_v53 = vpop.permute.xlu1 %728 }
 0x19f   :  { %v723_v31 = vadd.f32 %v721_v16, %v711_v28  ;;  %v733_v8 = vsel %vm150_vm11, %v2247_v3, %v729_v53  ;;  %v2431_v59 = vpop.permute.xlu0 %916  ;;  %v732_v52 = vsel %vm150_vm11, %v729_v53, %v2247_v3 }
 0x1a0   :  { %v735_v32 = vsel %vm1758_vm9, %v733_v8, 0.0  ;;  %v734_v3 = vsel %vm1736_vm6, %v732_v52, 0.0  ;;  %v724_v8 = vmul.f32 %v1831_v24, %v1535_v63 }
 0x1a1   :  { %v727_v56 = vadd.f32 %v725_v48, %v723_v31  ;;  %v737_v48 = vmul.f32 %v735_v32, %v1547_v7  ;;  %v722_v31 = vadd.f32 %v720_v40, %v710_v57 }
 0x1a2   :  { %v741_v50 = vpop.permute.xlu1 %740 }
 0x1a3   :  { %v745_v28 = vsel %vm2972_vm7, %v2257_v2, %v741_v50  ;;  %v744_v41 = vsel %vm2973_vm0, %v741_v50, %v2257_v2  ;;  %v739_v32 = vadd.f32 %v737_v48, %v727_v56  ;;  %v726_v52 = vadd.f32 %v724_v8, %v722_v31  ;;  %vm2975_vm7 = vmmov %vm2974_vm2 }
 0x1a4   :  { %v747_v16 = vsel %vm1852_vm15, %v745_v28, 0.0  ;;  %v2458_v28 = vpop.permute.xlu0 %928  ;;  %v746_v2 = vsel %vm1702_vm1, %v744_v41, 0.0  ;;  %vm2976_vm0 = vcmp.lt.s32.totalorder %v1673_v5, 15 }
 0x1a5   :  { %v749_v53 = vmul.f32 %v747_v16, %v1551_v12  ;;  %v736_v16 = vmul.f32 %v734_v3, %v1547_v7  ;;  %v748_v56 = vmul.f32 %v746_v2, %v1551_v12 }
 0x1a6   :  { %v753_v11 = vpop.permute.xlu1 %752 }
 0x1a7   :  { %v757_v4 = vsel %vm184_vm14, %v2265_v19, %v753_v11  ;;  %v751_v24 = vadd.f32 %v749_v53, %v739_v32  ;;  %v756_v41 = vsel %vm184_vm14, %v753_v11, %v2265_v19  ;;  %v738_v8 = vadd.f32 %v736_v16, %v726_v52 }
 0x1a8   :  { %v759_v51 = vsel %vm52_vm12, %v757_v4, 0.0  ;;  %v2480_v3 = vpop.permute.xlu0 %940  ;;  %v760_v11 = vmul.f32 %v756_v41, %v1561_v15 }
 0x1a9   :  { %v761_v50 = vmul.f32 %v759_v51, %v1561_v15  ;;  %v750_v19 = vadd.f32 %v748_v56, %v738_v8 }
 0x1aa   :  { %v765_v47 = vpop.permute.xlu1 %764 }
 0x1ab   :  { %v769_v58 = vsel %vm201_vm8, %v2281_v21, %v765_v47  ;;  %v763_v51 = vadd.f32 %v761_v50, %v751_v24  ;;  %v768_v31 = vsel %vm201_vm8, %v765_v47, %v2281_v21 }
 0x1ac   :  { %v771_v57 = vsel %vm1899_vm13, %v769_v58, 0.0  ;;  %v770_v21 = vsel %vm1736_vm6, %v768_v31, 0.0  ;;  %v2507_v16 = vpop.permute.xlu0 %956 }
 0x1ad   :  { %v773_v58 = vmul.f32 %v771_v57, %v1569_v18 }
 0x1ae   :  { %v790_v40 = vpop.permute.xlu1 %789 }
 0x1af   :  { %v793_v4 = vsel %vm2974_vm2, %v790_v40, %v2295_v43  ;;  %v775_v12 = vadd.f32 %v773_v58, %v763_v51  ;;  %v794_v57 = vsel %vm2975_vm7, %v2295_v43, %v790_v40  ;;  %v772_v40 = vmul.f32 %v770_v21, %v1569_v18  ;;  %vm2977_vm2 = vmmov %vm2976_vm0 }
 0x1b0   :  { %v796_v63 = vsel %vm1715_vm3, %v793_v4, 0.0  ;;  %v795_v43 = vsel %vm1723_vm4, %v794_v57, 0.0  ;;  %vm2978_vm7 = vcmp.ge.s32.totalorder %v1673_v5, 16  ;;  %v2981_v57 = vld [vmem:[#allocation16_spill] sm:$0xff] }
 0x1b1   :  { %v798_v7 = vmul.f32 %v796_v63, %v1577_v20  ;;  %v762_v63 = vadd.f32 %v760_v11, %v750_v19  ;;  %v797_v56 = vmul.f32 %v795_v43, %v1577_v20  ;;  %v838_v19 = vmul.f32 %v2981_v57, %v2920_v9 }
 0x1b2   :  { %v802_v48 = vpop.permute.xlu1 %801 }
 0x1b3   :  { %v805_v53 = vsel %vm2866_vm5, %v802_v48, %v2313_v60  ;;  %v800_v32 = vadd.f32 %v798_v7, %v775_v12  ;;  %v806_v2 = vsel %vm2866_vm5, %v2313_v60, %v802_v48  ;;  %v774_v31 = vadd.f32 %v772_v40, %v762_v63 }
 0x1b4   :  { %v810_v50 = vmul.f32 %v805_v53, %v1589_v23  ;;  %v807_v24 = vsel %vm2978_vm7, %v806_v2, 0.0  ;;  %vm2986_vm7 = vcmp.lt.s32.totalorder %v1673_v5, 17 }
 0x1b5   :  { %v809_v7 = vmul.f32 %v807_v24, %v1589_v23  ;;  %v837_v24 = vmul.f32 %v2089_v62, %v2920_v9 }
 0x1b6   :  { %v814_v47 = vpop.permute.xlu1 %813  ;;  %v812_v48 = vadd.f32 %v810_v50, %v800_v32 }
 0x1b7   :  { %v817_v4 = vsel %vm2976_vm0, %v814_v47, %v2325_v27  ;;  %v818_v52 = vsel %vm2977_vm2, %v2325_v27, %v814_v47  ;;  %vm2979_vm0 = vcmp.lt.s32.totalorder %v1673_v5, 1  ;;  %v2529_v47 = vpop.permute.xlu0 %968 }
 0x1b8   :  { %v820_v15 = vsel %vm1758_vm9, %v817_v4, 0.0  ;;  %vm2980_vm5 = vmmov %vm2979_vm0  ;;  %v819_v41 = vsel %vm1766_vm10, %v818_v52, 0.0 }
 0x1b9   :  { %v822_v60 = vmul.f32 %v820_v15, %v1597_v26  ;;  %v821_v11 = vmul.f32 %v819_v41, %v1597_v26 }
 0x1ba   :  { %v826_v58 = vpop.permute.xlu1 %825 }
 0x1bb   :  { %v829_v18 = vsel %vm2979_vm0, %v826_v58, %v2344_v35  ;;  %v830_v27 = vsel %vm2980_vm5, %v2344_v35, %v826_v58  ;;  %v824_v8 = vadd.f32 %v822_v60, %v812_v48  ;;  %v799_v35 = vadd.f32 %v797_v56, %v774_v31  ;;  %v2541_v52 = vpop.permute.xlu0 %980  ;;  %vm2987_vm0 = vmmov %vm2986_vm7 }
 0x1bc   :  { %v832_v51 = vsel %vm1715_vm3, %v829_v18, 0.0  ;;  %v831_v53 = vsel %vm1702_vm1, %v830_v27, 0.0  ;;  %vm2982_vm5 = vcmp.lt.s32.totalorder %v1673_v5, 113  ;;  %v2984_v18 = vld [vmem:[#allocation26_spill] sm:$0xff] }
 0x1bd   :  { %v834_v20 = vmul.f32 %v832_v51, %v1607_v29  ;;  %v811_v32 = vadd.f32 %v809_v7, %v799_v35  ;;  %v833_v2 = vmul.f32 %v831_v53, %v1607_v29  ;;  %vm2983_vm2 = vmmov %vm2982_vm5  ;;  %v2985_v35 = vld [vmem:[#allocation19_spill] sm:$0xff] }
 0x1be   :  { %v842_v12 = vpop.permute.xlu1 %841 }
 0x1bf   :  { %v836_v21 = vadd.f32 %v834_v20, %v824_v8  ;;  %v823_v4 = vadd.f32 %v821_v11, %v811_v32  ;;  %v845_v43 = vsel %vm150_vm11, %v842_v12, %v2356_v17  ;;  %v846_v15 = vsel %vm150_vm11, %v2356_v17, %v842_v12  ;;  %v2567_v7 = vpop.permute.xlu0 %992 }
 0x1c0   :  { %v847_v29 = vsel %vm1736_vm6, %v845_v43, 0.0  ;;  %v848_v17 = vsel %vm1758_vm9, %v846_v15, 0.0 }
 0x1c1   :  { %v840_v23 = vadd.f32 %v838_v19, %v836_v21  ;;  %v835_v40 = vadd.f32 %v833_v2, %v823_v4  ;;  %v849_v27 = vmul.f32 %v847_v29, %v2984_v18  ;;  %v850_v41 = vmul.f32 %v848_v17, %v2984_v18  ;;  %v2988_v4 = vld [vmem:[#allocation20_spill] sm:$0xff] }
 0x1c2   :  { %v854_v50 = vpop.permute.xlu1 %853 }
 0x1c3   :  { %v857_v26 = vsel %vm2982_vm5, %v854_v50, %v2374_v25  ;;  %v858_v60 = vsel %vm2983_vm2, %v2374_v25, %v854_v50  ;;  %v839_v48 = vadd.f32 %v837_v24, %v835_v40  ;;  %v852_v19 = vadd.f32 %v850_v41, %v840_v23  ;;  %v2591_v15 = vpop.permute.xlu0 %1017 }
 0x1c4   :  { %v859_v58 = vsel %vm1702_vm1, %v857_v26, 0.0  ;;  %v860_v25 = vsel %vm1852_vm15, %v858_v60, 0.0  ;;  %v2989_v60 = vld [vmem:[#allocation21_spill] sm:$0xff]  ;;  %vm2990_vm5 = vcmp.lt.s32.totalorder %v1673_v5, 16 }
 0x1c5   :  { %v861_v9 = vmul.f32 %v859_v58, %v2926_v6  ;;  %v862_v8 = vmul.f32 %v860_v25, %v2926_v6  ;;  %v851_v53 = vadd.f32 %v849_v27, %v839_v48  ;;  %vm2991_vm2 = vmmov %vm2990_vm5 }
 0x1c6   :  { %v866_v63 = vpop.permute.xlu1 %865 }
 0x1c7   :  { %v870_v56 = vsel %vm184_vm14, %v2393_v46, %v866_v63  ;;  %v869_v12 = vsel %vm184_vm14, %v866_v63, %v2393_v46  ;;  %v863_v32 = vadd.f32 %v861_v9, %v851_v53  ;;  %v864_v46 = vadd.f32 %v862_v8, %v852_v19  ;;  %v2614_v8 = vpop.permute.xlu0 %1029 }
 0x1c8   :  { %v872_v62 = vsel %vm52_vm12, %v870_v56, 0.0  ;;  %v873_v50 = vmul.f32 %v869_v12, %v2985_v35 }
 0x1c9   :  { %v874_v11 = vmul.f32 %v872_v62, %v2985_v35 }
 0x1ca   :  { %v878_v51 = vpop.permute.xlu1 %877  ;;  %v875_v17 = vadd.f32 %v873_v50, %v863_v32 }
 0x1cb   :  { %v882_v31 = vsel %vm201_vm8, %v2411_v54, %v878_v51  ;;  %v881_v20 = vsel %vm201_vm8, %v878_v51, %v2411_v54  ;;  %v876_v40 = vadd.f32 %v874_v11, %v864_v46  ;;  %v2993_v51 = vld [vmem:[#allocation24_spill] sm:$0xff] }
 0x1cc   :  { %v884_v57 = vsel %vm1899_vm13, %v882_v31, 0.0  ;;  %v883_v6 = vsel %vm1736_vm6, %v881_v20, 0.0 }
 0x1cd   :  { %v886_v23 = vmul.f32 %v884_v57, %v2988_v4  ;;  %v885_v26 = vmul.f32 %v883_v6, %v2988_v4  ;;  %v2634_v4 = vpop.permute.xlu0 %1041 }
 0x1ce   :  { %v903_v21 = vpop.permute.xlu1 %902 }
 0x1cf   :  { %v906_v54 = vsel %vm2986_vm7, %v903_v21, %v2418_v1  ;;  %v907_v2 = vsel %vm2987_vm0, %v2418_v1, %v903_v21  ;;  %v888_v58 = vadd.f32 %v886_v23, %v876_v40  ;;  %vm2992_vm7 = vcmp.ge.s32.totalorder %v1673_v5, 16 }
 0x1d0   :  { %v909_v43 = vsel %vm1715_vm3, %v906_v54, 0.0  ;;  %v908_v29 = vsel %vm1723_vm4, %v907_v2, 0.0  ;;  %v887_v27 = vadd.f32 %v885_v26, %v875_v17  ;;  %vm2994_vm0 = vcmp.lt.s32.totalorder %v1673_v5, 15 }
 0x1d1   :  { %v911_v63 = vmul.f32 %v909_v43, %v2989_v60  ;;  %v910_v18 = vmul.f32 %v908_v29, %v2989_v60  ;;  %v950_v43 = vmul.f32 %v2213_v49, %v2133_v22  ;;  %v2643_v17 = vpop.permute.xlu0 %1053 }
 0x1d2   :  { %v915_v24 = vpop.permute.xlu1 %914 }
 0x1d3   :  { %v919_v1 = vsel %vm2990_vm5, %v2431_v59, %v915_v24  ;;  %v918_v56 = vsel %vm2991_vm2, %v915_v24, %v2431_v59  ;;  %v913_v25 = vadd.f32 %v911_v63, %v888_v58  ;;  %vm2995_vm5 = vmmov %vm2994_vm0  ;;  %v912_v12 = vadd.f32 %v910_v18, %v887_v27 }
 0x1d4   :  { %v920_v48 = vsel %vm2992_vm7, %v919_v1, 0.0  ;;  %v923_v62 = vmul.f32 %v918_v56, %v2993_v51  ;;  %vm2996_vm2 = vcmp.lt.s32.totalorder %v1673_v5, 1 }
 0x1d5   :  { %v922_v9 = vmul.f32 %v920_v48, %v2993_v51  ;;  %vm2997_vm7 = vmmov %vm2996_vm2 }
 0x1d6   :  { %v927_v41 = vpop.permute.xlu1 %926  ;;  %v925_v21 = vadd.f32 %v923_v62, %v913_v25 }
 0x1d7   :  { %v930_v31 = vsel %vm2994_vm0, %v927_v41, %v2458_v28  ;;  %v931_v59 = vsel %vm2995_vm5, %v2458_v28, %v927_v41  ;;  %v924_v11 = vadd.f32 %v922_v9, %v912_v12  ;;  %vm2999_vm0 = vcmp.lt.s32.totalorder %v1673_v5, 113  ;;  %v2666_v41 = vpop.permute.xlu0 %1069  ;;  %v3001_v9 = vld [vmem:[#allocation34_spill] sm:$0xff] }
 0x1d8   :  { %v932_v20 = vsel %vm1766_vm10, %v931_v59, 0.0  ;;  %v933_v53 = vsel %vm1758_vm9, %v930_v31, 0.0  ;;  %vm3000_vm5 = vmmov %vm2999_vm0 }
 0x1d9   :  { %v934_v57 = vmul.f32 %v932_v20, %v2938_v34  ;;  %v935_v19 = vmul.f32 %v933_v53, %v2938_v34 }
 0x1da   :  { %v939_v35 = vpop.permute.xlu1 %938 }
 0x1db   :  { %v942_v28 = vsel %vm2996_vm2, %v939_v35, %v2480_v3  ;;  %v943_v32 = vsel %vm2997_vm7, %v2480_v3, %v939_v35  ;;  %v936_v2 = vadd.f32 %v934_v57, %v924_v11  ;;  %v937_v46 = vadd.f32 %v935_v19, %v925_v21  ;;  %v2998_v3 = vld [vmem:[#allocation28_spill] sm:$0xff]  ;;  %v3002_v35 = vld [vmem:[#allocation35_spill] sm:$0xff] }
 0x1dc   :  { %v944_v6 = vsel %vm1702_vm1, %v943_v32, 0.0  ;;  %v945_v54 = vsel %vm1715_vm3, %v942_v28, 0.0  ;;  %v951_v40 = vmul.f32 %v2998_v3, %v2133_v22  ;;  %vm3003_vm2 = vcmp.lt.s32.totalorder %v1673_v5, 17 }
 0x1dd   :  { %v946_v34 = vmul.f32 %v944_v6, %v2940_v44  ;;  %v947_v50 = vmul.f32 %v945_v54, %v2940_v44  ;;  %vm3004_vm7 = vmmov %vm3003_vm2 }
 0x1de   :  { %v955_v23 = vpop.permute.xlu1 %954 }
 0x1df   :  { %v948_v26 = vadd.f32 %v946_v34, %v936_v2  ;;  %v949_v29 = vadd.f32 %v947_v50, %v937_v46  ;;  %v958_v1 = vsel %vm150_vm11, %v955_v23, %v2507_v16  ;;  %v959_v44 = vsel %vm150_vm11, %v2507_v16, %v955_v23 }
 0x1e0   :  { %v960_v22 = vsel %vm1736_vm6, %v958_v1, 0.0  ;;  %v961_v48 = vsel %vm1758_vm9, %v959_v44, 0.0 }
 0x1e1   :  { %v952_v60 = vadd.f32 %v950_v43, %v948_v26  ;;  %v953_v63 = vadd.f32 %v951_v40, %v949_v29  ;;  %v962_v27 = vmul.f32 %v960_v22, %v2161_v38 }
 0x1e2   :  { %v967_v24 = vpop.permute.xlu1 %966 }
 0x1e3   :  { %v970_v49 = vsel %vm2999_vm0, %v967_v24, %v2529_v47  ;;  %v971_v58 = vsel %vm3000_vm5, %v2529_v47, %v967_v24  ;;  %v963_v47 = vmul.f32 %v961_v48, %v2161_v38  ;;  %v964_v12 = vadd.f32 %v962_v27, %v952_v60 }
 0x1e4   :  { %v972_v18 = vsel %vm1702_vm1, %v970_v49, 0.0  ;;  %v973_v25 = vsel %vm1852_vm15, %v971_v58, 0.0  ;;  %vm3005_vm0 = vcmp.lt.s32.totalorder %v1673_v5, 16  ;;  %v3008_v49 = vld [vmem:[#allocation37_spill] sm:$0xff] }
 0x1e5   :  { %v974_v62 = vmul.f32 %v972_v18, %v3001_v9  ;;  %v975_v20 = vmul.f32 %v973_v25, %v3001_v9  ;;  %v965_v19 = vadd.f32 %v963_v47, %v953_v63  ;;  %vm3006_vm5 = vmmov %vm3005_vm0 }
 0x1e6   :  { %v979_v56 = vpop.permute.xlu1 %978 }
 0x1e7   :  { %v983_v16 = vsel %vm184_vm14, %v2541_v52, %v979_v56  ;;  %v982_v38 = vsel %vm184_vm14, %v979_v56, %v2541_v52  ;;  %v976_v28 = vadd.f32 %v974_v62, %v964_v12  ;;  %v2693_v52 = vpop.permute.xlu0 %1079  ;;  %v977_v54 = vadd.f32 %v975_v20, %v965_v19 }
 0x1e8   :  { %v985_v31 = vsel %vm52_vm12, %v983_v16, 0.0  ;;  %v986_v2 = vmul.f32 %v982_v38, %v3002_v35  ;;  %v3011_v16 = vld [vmem:[#allocation23_spill] sm:$0xff] }
 0x1e9   :  { %v987_v11 = vmul.f32 %v985_v31, %v3002_v35  ;;  %v3015_v35 = vld [vmem:[#allocation36_spill] sm:$0xff] }
 0x1ea   :  { %v991_v51 = vpop.permute.xlu1 %990  ;;  %v988_v26 = vadd.f32 %v986_v2, %v976_v28 }
 0x1eb   :  { %v995_v59 = vsel %vm201_vm8, %v2567_v7, %v991_v51  ;;  %v994_v53 = vsel %vm201_vm8, %v991_v51, %v2567_v7  ;;  %v989_v50 = vadd.f32 %v987_v11, %v977_v54  ;;  %v1092_v37 = vpop.permute.xlu0 %1091  ;;  %v1064_v11 = vmul.f32 %v3015_v35, %v2297_v55 }
 0x1ec   :  { %v997_v57 = vsel %vm1899_vm13, %v995_v59, 0.0  ;;  %v996_v32 = vsel %vm1736_vm6, %v994_v53, 0.0 }
 0x1ed   :  { %v999_v46 = vmul.f32 %v997_v57, %v1929_v14  ;;  %v998_v23 = vmul.f32 %v996_v32, %v1929_v14  ;;  %v3014_v57 = vld [vmem:[#allocation29_spill] sm:$0xff] }
 0x1ee   :  { %v1016_v21 = vpop.permute.xlu1 %1015  ;;  %v1063_v19 = vmul.f32 %v3014_v57, %v2297_v55 }
 0x1ef   :  { %v1019_v7 = vsel %vm3003_vm2, %v1016_v21, %v2591_v15  ;;  %v1020_v6 = vsel %vm3004_vm7, %v2591_v15, %v1016_v21  ;;  %v1001_v29 = vadd.f32 %v999_v46, %v989_v50  ;;  %vm3007_vm2 = vcmp.ge.s32.totalorder %v1673_v5, 16  ;;  %v3016_v21 = vld [vmem:[#allocation31_spill] sm:$0xff] }
 0x1f0   :  { %v1022_v34 = vsel %vm1715_vm3, %v1019_v7, 0.0  ;;  %v1021_v43 = vsel %vm1723_vm4, %v1020_v6, 0.0  ;;  %v1000_v24 = vadd.f32 %v998_v23, %v988_v26  ;;  %vm3009_vm4 = vcmp.lt.s32.totalorder %v1673_v5, 15 }
 0x1f1   :  { %v1024_v3 = vmul.f32 %v1022_v34, %v1974_v30  ;;  %v1023_v14 = vmul.f32 %v1021_v43, %v1974_v30  ;;  %vm3010_vm7 = vmmov %vm3009_vm4 }
 0x1f2   :  { %v1028_v40 = vpop.permute.xlu1 %1027 }
 0x1f3   :  { %v1032_v15 = vsel %vm3005_vm0, %v2614_v8, %v1028_v40  ;;  %v1031_v60 = vsel %vm3006_vm5, %v1028_v40, %v2614_v8  ;;  %v1026_v1 = vadd.f32 %v1024_v3, %v1001_v29  ;;  %v1025_v18 = vadd.f32 %v1023_v14, %v1000_v24  ;;  %v3017_v3 = vld [vmem:[#allocation9_spill] sm:$0xff] }
 0x1f4   :  { %v1033_v63 = vsel %vm3007_vm2, %v1032_v15, 0.0  ;;  %v1036_v58 = vmul.f32 %v1031_v60, %v3008_v49  ;;  %vm3012_vm0 = vcmp.lt.s32.totalorder %v1673_v5, 1  ;;  %v3018_v15 = vld [vmem:[#allocation18_spill] sm:$0xff] }
 0x1f5   :  { %v1035_v22 = vmul.f32 %v1033_v63, %v3008_v49  ;;  %vm3013_vm5 = vmmov %vm3012_vm0  ;;  %v3019_v63 = vld [vmem:[#allocation22_spill] sm:$0xff]  ;;  %v3022_v49 = vld [vmem:[#allocation17_spill] sm:$0xff] }
 0x1f6   :  { %v1040_v44 = vpop.permute.xlu1 %1039  ;;  %v1038_v9 = vadd.f32 %v1036_v58, %v1026_v1 }
 0x1f7   :  { %v1043_v56 = vsel %vm3009_vm4, %v1040_v44, %v2634_v4  ;;  %v1044_v8 = vsel %vm3010_vm7, %v2634_v4, %v1040_v44  ;;  %v1037_v51 = vadd.f32 %v1035_v22, %v1025_v18  ;;  %v648_v4 = vpop.permute.xlu0 %647 }
 0x1f8   :  { %v1045_v48 = vsel %vm1766_vm10, %v1044_v8, 0.0  ;;  %v1046_v30 = vsel %vm1758_vm9, %v1043_v56, 0.0  ;;  %v649_v28 = vsel %vm201_vm8, %v3016_v21, %v648_v4  ;;  %v650_v33 = vsel %vm201_vm8, %v648_v4, %v3016_v21 }
 0x1f9   :  { %v1047_v27 = vmul.f32 %v1045_v48, %v3011_v16  ;;  %v1048_v25 = vmul.f32 %v1046_v30, %v3011_v16  ;;  %v651_v55 = vsel %vm1736_vm6, %v649_v28, 0.0  ;;  %v652_v2 = vsel %vm1899_vm13, %v650_v33, 0.0  ;;  %v3023_v16 = vld [vmem:[#allocation8_spill] sm:$0xff] }
 0x1fa   :  { %v1052_v47 = vpop.permute.xlu1 %1051 }
 0x1fb   :  { %v1055_v62 = vsel %vm3012_vm0, %v1052_v47, %v2643_v17  ;;  %v1056_v0 = vsel %vm3013_vm5, %v2643_v17, %v1052_v47  ;;  %v1049_v20 = vadd.f32 %v1047_v27, %v1037_v51  ;;  %v1050_v53 = vadd.f32 %v1048_v25, %v1038_v9  ;;  %v1106_v30 = vpop.permute.xlu0 %1105 }
 0x1fc   :  { %v1057_v31 = vsel %vm1702_vm1, %v1056_v0, 0.0  ;;  %v1058_v59 = vsel %vm1715_vm3, %v1055_v62, 0.0  ;;  %vm3020_vm3 = vcmp.lt.s32.totalorder %v1673_v5, 113 }
 0x1fd   :  { %v1059_v12 = vmul.f32 %v1057_v31, %v2066_v10  ;;  %v1060_v38 = vmul.f32 %v1058_v59, %v2066_v10  ;;  %vm3021_vm10 = vmmov %vm3020_vm3 }
 0x1fe   :  { %v1068_v17 = vpop.permute.xlu1 %1067 }
 0x1ff   :  { %v1061_v32 = vadd.f32 %v1059_v12, %v1049_v20  ;;  %v1062_v7 = vadd.f32 %v1060_v38, %v1050_v53  ;;  %v1071_v10 = vsel %vm150_vm11, %v1068_v17, %v2666_v41  ;;  %v1072_v34 = vsel %vm150_vm11, %v2666_v41, %v1068_v17 }
 0x200   :  { %v1073_v43 = vsel %vm1736_vm6, %v1071_v10, 0.0  ;;  %v1074_v29 = vsel %vm1758_vm9, %v1072_v34, 0.0 }
 0x201   :  { %v1065_v6 = vadd.f32 %v1063_v19, %v1061_v32  ;;  %v1066_v54 = vadd.f32 %v1064_v11, %v1062_v7  ;;  %v1075_v14 = vmul.f32 %v1073_v43, %v3019_v63  ;;  %v1076_v44 = vmul.f32 %v1074_v29, %v3019_v63 }
 0x202   :  { %v655_v46 = vpop.permute.xlu1 %654 }
 0x203   :  { %v657_v50 = vmul.f32 %v655_v46, %v651_v55  ;;  %v658_v23 = vmul.f32 %v655_v46, %v652_v2  ;;  %v1077_v56 = vadd.f32 %v1075_v14, %v1065_v6  ;;  %v1078_v42 = vadd.f32 %v1076_v44, %v1066_v54 }
 0x205   :  { %v659_v40 = vadd.f32 %v657_v50, %v3017_v3  ;;  %v660_v26 = vadd.f32 %v658_v23, %v3018_v15 }
 0x206   :  { %v1082_v60 = vpop.permute.xlu1 %1081 }
 0x207   :  { %661 = vst [vmem:[#allocation5] sm:$0xff] %v659_v40  ;;  %662 = vst [vmem:[#allocation5 + $0x8] sm:$0xff] %v660_v26  ;;  %v1083_v41 = vsel %vm3020_vm3, %v2693_v52, %v1082_v60  ;;  %v1084_v24 = vsel %vm3021_vm10, %v1082_v60, %v2693_v52 }
 0x208   :  { %v1085_v1 = vsel %vm1702_vm1, %v1083_v41, 0.0  ;;  %v1086_v45 = vsel %vm1852_vm15, %v1084_v24, 0.0 }
 0x209   :  { %v1087_v22 = vmul.f32 %v1085_v1, %v3022_v49  ;;  %v1088_v8 = vmul.f32 %v1086_v45, %v3022_v49 }
 0x20a   :  { %v1094_v58 = vpop.permute.xlu1 %1093 }
 0x20b   :  { %v1095_v48 = vsel %vm184_vm14, %v1092_v37, %v1094_v58  ;;  %v1096_v52 = vsel %vm184_vm14, %v1094_v58, %v1092_v37  ;;  %v1089_v18 = vadd.f32 %v1087_v22, %v1077_v56  ;;  %v1090_v51 = vadd.f32 %v1088_v8, %v1078_v42 }
 0x20c   :  { %v1098_v36 = vsel %vm52_vm12, %v1096_v52, 0.0  ;;  %v1099_v27 = vmul.f32 %v1095_v48, %v3023_v16 }
 0x20d   :  { %v1100_v25 = vmul.f32 %v1098_v36, %v3023_v16 }
 0x20e   :  { %v1104_v47 = vpop.permute.xlu1 %1103  ;;  %v1101_v0 = vadd.f32 %v1099_v27, %v1089_v18 }
 0x20f   :  { %v1107_v9 = vsel %vm201_vm8, %v1104_v47, %v1106_v30  ;;  %v1108_v62 = vsel %vm201_vm8, %v1106_v30, %v1104_v47  ;;  %v1102_v4 = vadd.f32 %v1100_v25, %v1090_v51 }
 0x210   :  { %v1109_v37 = vsel %vm1736_vm6, %v1107_v9, 0.0  ;;  %v1110_v13 = vsel %vm1899_vm13, %v1108_v62, 0.0 }
 0x211   :  { %v1111_v31 = vmul.f32 %v1109_v37, %v655_v46  ;;  %v1112_v59 = vmul.f32 %v1110_v13, %v655_v46 }
 0x213   :  { %v1113_v20 = vadd.f32 %v1111_v31, %v1101_v0  ;;  %v1114_v53 = vadd.f32 %v1112_v59, %v1102_v4 }
 0x215   :  { %1116 = vst [vmem:[#allocation5 + $0x10] sm:$0xff] %v1113_v20  ;;  %1117 = vst [vmem:[#allocation5 + $0x18] sm:$0xff] %v1114_v53 }
 0x216   :  { %1259 = shalt.err (!%p1256_p12)
}
 0x217   :  { %s1260_s15 = scalar_lea.hbm %s2810_s3, 512 }
 0x218   :  { %p1261_p13 = scmp.ne.s32.totalorder %s2810_s3, %s1260_s15  ;;  %p1264_p0 = scmp.lt.u32.totalorder %s1260_s15, %s2810_s3 }
 0x21a   :  { %p1266_p1 = pnand %p1264_p0, %p1261_p13 }
 0x21c   :  { %1269 = shalt.err (!%p1266_p1)
}
 0x21d   :  { %s1322_s20 = smov 256  }
 0x21e   :  { %1129 = dma.vmem_to_hbm [thread:$0]  %s1124_s11, 512, %s2810_s3, [#allocation4], %s1322_s20, %s1322_s20, %s1281_s2  }
 0x21f   :  { %1272 = dma.done.wait [#allocation4], 512  }
 0x220   :  { %1273 = vsyncadd [#allocation4], 4294966784 }
 0x221   :  { %1133 = vsyncpa [#allocation3], 1 }
 0x222   :  { %1134 = vsyncpa [#allocation4], 1 }

</bundles_post_ra>
